<compile_context>
chip_gen: v6e
topology: v6e:2x2x1
jax: 0.10.0
libtpu: 0.0.40
codegen_flags: <defaults>
</compile_context>

<pallas_src>
import numpy as np
import jax
import jax.numpy as jnp
from jax.experimental import pallas as pl
from jax.experimental.pallas import tpu as pltpu

N_CLASS = 4                    # num_classes (includes background)
NC4 = N_CLASS + 4              # raw head channels per anchor: classes + (dx,dy,dw,dh)
OUT_C = N_CLASS + 20           # decoded channels per anchor

CFG = dict(
    input_size=16,
    scales=[0.1, 0.2, 0.375, 0.55, 0.725, 0.9],
    grid_w=[16, 8, 4, 2, 1, 1],
    grid_h=[16, 8, 4, 2, 1, 1],
    anchor_n=[4, 4, 6, 6, 4, 4],
)

A_TOTAL = sum(gh * gw * na for gh, gw, na in
              zip(CFG['grid_h'], CFG['grid_w'], CFG['anchor_n']))   # 1408 = 11 * 128


# ------------------------- fused Pallas kernel -------------------------

def _fused_ssd_kernel(x_ref, m_ref, c_ref, out_ref):
    # x_ref:   (B*C_IN, H*W)   flattened input images, one row per (batch, channel)
    # m_ref:   (H*W, A)        pooling + per-anchor-expansion matrix (constant)
    # c_ref:   (C_IN*NC4 + NC4 + 4, A) packed constants (one DMA):
    #              rows [0 : C_IN*8)          per-anchor 1x1-conv weights, W[k] = rows k*8:(k+1)*8
    #              rows [C_IN*8 : C_IN*8+8)   per-anchor bias
    #              rows [C_IN*8+8 : +12)      anchors (cx, cy, w, h)
    # out_ref: (B, OUT_C, A)   decoded output, channel-major (lane-dense)
    B = out_ref.shape[0]
    C_IN = x_ref.shape[0] // B

    # Backbone feature pyramid + per-anchor expansion fused into one MXU matmul:
    # F[r, a] = sum_p x[r, p] * M[p, a]  (average pool over each anchor's grid cell).
    # TODO(synk): default matmul precision may use bf16 passes; pass
    # precision=lax.Precision.HIGHEST if exact f32 mean-pool parity is required.
    F = jnp.dot(x_ref[...], m_ref[...],
                preferred_element_type=jnp.float32)        # (B*C_IN, A)

    bias = c_ref[C_IN * NC4:C_IN * NC4 + NC4, :]           # (8, A)
    anc = c_ref[C_IN * NC4 + NC4:C_IN * NC4 + NC4 + 4, :]  # (4, A): cx, cy, w, h

    for b in range(B):                                     # static unroll, B = 2
        # ---- SSD head: 1x1 conv as C_IN unrolled VPU FMAs (contraction dim is
        #      only 4 — not worth MXU push/pop latency on any TPU generation).
        pred = bias                                        # (8, A)
        for k in range(C_IN):                              # static unroll over C_IN = 4
            pred = pred + (F[b * C_IN + k:b * C_IN + k + 1, :]
                           * c_ref[k * NC4:(k + 1) * NC4, :])

        # ---- anchor-box decode (postprocess), all lane-dense row math ----
        cls = pred[0:N_CLASS, :]                           # (4, A)
        d = pred[N_CLASS:N_CLASS + 4, :]                   # (4, A): dx, dy, dw, dh

        cxcy = d[0:2, :] * anc[2:4, :] * 0.1 + anc[0:2, :]  # (2, A)
        # TODO(synk): exp is unclamped, matching the torch reference decode.
        wh = jnp.exp(d[2:4, :] * 0.2) * anc[2:4, :]          # (2, A)
        half = wh * 0.5
        x1y1 = cxcy - half                                   # (2, A)
        x2y2 = cxcy + half                                   # (2, A)

        # Row order matches torch.concat(
        #   [class_pred, x1,y1,x2,y2, dx,dy,dw,dh, anchor, cx,cy,w,h, x1,y1,x2,y2])
        # Three aligned 8-row band stores (no sublane-masked 2-row stores).
        out_ref[b, 0:8, :] = jnp.concatenate([cls, x1y1, x2y2], axis=0)
        out_ref[b, 8:16, :] = jnp.concatenate([d, anc], axis=0)
        out_ref[b, 16:24, :] = jnp.concatenate([cxcy, wh, x1y1, x2y2], axis=0)


def fused_ssd_call(x_flat, pool_m, packed_const, batch):
    """Single pallas_call, single grid step: backbone pyramid + all 6 SSD heads
    + anchor decode, channel-major output."""
    BC, HW = x_flat.shape
    R, A = packed_const.shape
    return pl.pallas_call(
        _fused_ssd_kernel,
        out_shape=jax.ShapeDtypeStruct((batch, OUT_C, A), jnp.float32),
        grid=(1,),                                   # batch folded into one step
        in_specs=[
            pl.BlockSpec((BC, HW), lambda i: (0, 0)),
            pl.BlockSpec((HW, A), lambda i: (0, 0)),
            pl.BlockSpec((R, A), lambda i: (0, 0)),
        ],
        out_specs=pl.BlockSpec((batch, OUT_C, A), lambda i: (0, 0, 0)),
        compiler_params=pltpu.CompilerParams(
            dimension_semantics=("arbitrary",)),
    )(x_flat, pool_m, packed_const)


# ------------------------- anchor generation (constant setup, plain JAX) ---------

def get_anchor(fh, fw, n_anchor, s1, s2):
    grid = jnp.linspace(0.0, 1.0, fw + 1)
    grid = (grid[:-1] + grid[1:]) / 2.0
    grid_w = jnp.tile(grid[None, :], (fh, 1))
    grid = jnp.linspace(0.0, 1.0, fh + 1)
    grid = (grid[:-1] + grid[1:]) / 2.0
    grid_h = jnp.tile(grid[:, None], (1, fw))
    cx = grid_w.reshape(-1, 1)
    cy = grid_h.reshape(-1, 1)
    na = fw * fh

    def wh(aw, ah):
        return jnp.full((na, 1), aw, jnp.float32), jnp.full((na, 1), ah, jnp.float32)

    cw, ch = wh(s1, s1)
    a1 = jnp.concatenate([cx, cy, cw, ch], axis=1)
    s = float(np.sqrt(s1 * s2))
    cw, ch = wh(s, s)
    a2 = jnp.concatenate([cx, cy, cw, ch], axis=1)
    aw, ah = s1 * float(np.sqrt(2.0)), s1 / float(np.sqrt(2.0))
    cw, ch = wh(aw, ah)
    a3_1 = jnp.concatenate([cx, cy, cw, ch], axis=1)
    a3_2 = jnp.concatenate([cx, cy, ch, cw], axis=1)
    if n_anchor != 6:
        anchors = jnp.concatenate([a1, a2, a3_1, a3_2], axis=1)
    else:
        aw, ah = s1 * float(np.sqrt(3.0)), s1 / float(np.sqrt(3.0))
        cw, ch = wh(aw, ah)
        a4_1 = jnp.concatenate([cx, cy, cw, ch], axis=1)
        a4_2 = jnp.concatenate([cx, cy, ch, cw], axis=1)
        anchors = jnp.concatenate([a1, a2, a3_1, a3_2, a4_1, a4_2], axis=1)
    anchors = anchors.reshape(-1, 4)
    return jnp.clip(anchors, 0.0, 1.0)


def anchor_generator(scale, grid_w, grid_h, anchor_n):
    parts = []
    for i in range(6):
        s2 = scale[i + 1] if i + 1 < len(scale) else 1.0
        parts.append(get_anchor(grid_h[i], grid_w[i], anchor_n[i], scale[i], s2))
    return jnp.concatenate(parts, axis=0)


# ------------------------- synthetic SSD model parameters -------------------------

def init_params(C):
    params = []
    for lvl, na in enumerate(CFG['anchor_n']):
        K = na * NC4
        kw, kb = jax.random.split(jax.random.PRNGKey(100 + lvl))
        w = jax.random.normal(kw, (C, K), jnp.float32) * 0.1
        b = jax.random.normal(kb, (1, K), jnp.float32) * 0.01
        params.append((w, b))
    return params


def build_packed_const(params, anchors):
    """Pack per-anchor 1x1-conv weights (C*8 rows), bias (8 rows) and anchors
    (4 rows) into a single channel-major (C*8+12, A) constant -> one input DMA.
    Init-time work."""
    w_parts, b_parts = [], []
    for lvl, (gh, gw, na) in enumerate(
            zip(CFG['grid_h'], CFG['grid_w'], CFG['anchor_n'])):
        w, b = params[lvl]                                   # (C, na*NC4), (1, na*NC4)
        C = w.shape[0]
        w = w.reshape(C, na, NC4)                            # w[c, j, o]
        b = b.reshape(na, NC4)                               # b[j, o]
        S = gh * gw
        w = jnp.tile(w[:, None, :, :], (1, S, 1, 1)).reshape(C, S * na, NC4)
        b = jnp.tile(b[None, :, :], (S, 1, 1)).reshape(S * na, NC4)
        w_parts.append(w)
        b_parts.append(b)
    W = jnp.transpose(jnp.concatenate(w_parts, axis=1), (0, 2, 1))   # (C, NC4, A)
    Bv = jnp.concatenate(b_parts, axis=0).T                          # (NC4, A)
    C = W.shape[0]
    return jnp.concatenate([W.reshape(C * NC4, A_TOTAL), Bv, anchors.T], axis=0)


def build_pool_matrix():
    """(H*W, A) matrix implementing avg-pool of each pyramid level + per-anchor
    expansion as a single matmul.  Init-time numpy work."""
    H = W = CFG['input_size']
    M = np.zeros((H * W, A_TOTAL), np.float32)
    a0 = 0
    for gh, gw, na in zip(CFG['grid_h'], CFG['grid_w'], CFG['anchor_n']):
        fh, fw = H // gh, W // gw
        inv = 1.0 / float(fh * fw)
        for gi in range(gh):
            for gj in range(gw):
                cell = gi * gw + gj
                cols = a0 + cell * na + np.arange(na)
                rows = np.add.outer((gi * fh + np.arange(fh)) * W,
                                    gj * fw + np.arange(fw)).reshape(-1)
                M[np.ix_(rows, cols)] = inv
        a0 += gh * gw * na
    return jnp.asarray(M)


# ------------------------- forward + decode -------------------------

@jax.jit
def ssd_forward_and_decode(x_nchw, pool_m, packed_const):
    """Fused equivalent of `forward()` (model call) + `postprocess()` (decode).

    Returns the decoded tensor channel-major: (B, 24, A).  Row order matches the
    torch concat; downstream NMS/top-k should consume this layout directly to
    avoid the transpose.  The raw head predictions (forward() output) are rows
    0:4 (classes) and 8:12 (deltas) of this tensor."""
    B, C, H, W = x_nchw.shape
    x_flat = x_nchw.reshape(B * C, H * W)           # contiguous reshape, free
    return fused_ssd_call(x_flat, pool_m, packed_const, B)


def to_torch_layout(dec_cm):
    """Optional conversion back to the PyTorch (B, anchors, channels) convention.
    preds (== forward() output) is sliced from the decoded tensor — no separate
    kernel output or extra transpose."""
    decoded = jnp.transpose(dec_cm, (0, 2, 1))                      # (B, A, 24)
    preds = jnp.concatenate([decoded[..., 0:N_CLASS],
                             decoded[..., N_CLASS + 4:N_CLASS + 8]], axis=-1)
    return preds, decoded


if __name__ == "__main__":
    key = jax.random.PRNGKey(0)
    B, C, H, W = 2, 4, 16, 16
    x = jax.random.normal(key, (B, C, H, W), jnp.float32)

    # Init-time constants.
    params = init_params(C)
    anchors = anchor_generator(CFG['scales'], CFG['grid_w'],
                               CFG['grid_h'], CFG['anchor_n'])      # (A, 4)
    packed_const = build_packed_const(params, anchors)              # (C*8+12, A)
    pool_m = build_pool_matrix()                                    # (H*W, A)

    dec_cm = ssd_forward_and_decode(x, pool_m, packed_const)
    dec_cm = jax.block_until_ready(dec_cm)
    assert dec_cm.shape == (B, OUT_C, A_TOTAL), dec_cm.shape

    preds, decoded = to_torch_layout(dec_cm)
    preds, decoded = jax.block_until_ready((preds, decoded))
    assert preds.shape == (B, A_TOTAL, NC4), preds.shape
    assert decoded.shape == (B, A_TOTAL, OUT_C), decoded.shape
    assert anchors.shape == (A_TOTAL, 4), anchors.shape
    assert bool(jnp.all(jnp.isfinite(decoded)))
    print("KERNEL_OK")
</pallas_src>

<mosaic_0001>
module attributes {stable_mosaic.version = 11 : i64} {
  func.func @_fused_ssd_kernel(%arg0: i32, %arg1: memref<8x256xf32, #tpu.memory_space<vmem>>, %arg2: memref<256x1408xf32, #tpu.memory_space<vmem>>, %arg3: memref<44x1408xf32, #tpu.memory_space<vmem>>, %arg4: memref<2x24x1408xf32, #tpu.memory_space<vmem>>) attributes {dimension_semantics = [#tpu.dimension_semantics<arbitrary>], iteration_bounds = array<i64: 1>, scalar_prefetch = 0 : i64, scratch_operands = 0 : i64, tpu.core_type = #tpu.core_type<tc>, window_params = [{pipeline_mode = #tpu.pipeline_mode<synchronous>, transform_indices = @transform_0, window_bounds = array<i64: 8, 256>}, {pipeline_mode = #tpu.pipeline_mode<synchronous>, transform_indices = @transform_1, window_bounds = array<i64: 256, 1408>}, {pipeline_mode = #tpu.pipeline_mode<synchronous>, transform_indices = @transform_2, window_bounds = array<i64: 44, 1408>}, {pipeline_mode = #tpu.pipeline_mode<synchronous>, transform_indices = @transform_3, window_bounds = array<i64: 2, 24, 1408>}]} {
    %c0 = arith.constant 0 : index
    %c0_0 = arith.constant 0 : index
    %0 = vector.load %arg1[%c0, %c0_0] : memref<8x256xf32, #tpu.memory_space<vmem>>, vector<8x256xf32>
    %c0_1 = arith.constant 0 : index
    %c0_2 = arith.constant 0 : index
    %1 = vector.load %arg2[%c0_1, %c0_2] : memref<256x1408xf32, #tpu.memory_space<vmem>>, vector<256x1408xf32>
    %cst = arith.constant dense<0.000000e+00> : vector<8x1408xf32>
    %2 = tpu.matmul %0, %1, %cst {dimension_numbers = #tpu.dot_dimension_numbers<[1], [0], [0], [1], [0, 0, 1, 1], [], []>} : vector<8x256xf32>, vector<256x1408xf32>, vector<8x1408xf32> -> vector<8x1408xf32>
    %c32 = arith.constant 32 : index
    %c0_3 = arith.constant 0 : index
    %3 = vector.load %arg3[%c32, %c0_3] : memref<44x1408xf32, #tpu.memory_space<vmem>>, vector<8x1408xf32>
    %c40 = arith.constant 40 : index
    %c0_4 = arith.constant 0 : index
    %4 = vector.load %arg3[%c40, %c0_4] : memref<44x1408xf32, #tpu.memory_space<vmem>>, vector<4x1408xf32>
    %5 = vector.extract_strided_slice %2 {offsets = [0, 0], sizes = [1, 1408], strides = [1, 1]} : vector<8x1408xf32> to vector<1x1408xf32>
    %c0_5 = arith.constant 0 : index
    %c0_6 = arith.constant 0 : index
    %6 = vector.load %arg3[%c0_5, %c0_6] : memref<44x1408xf32, #tpu.memory_space<vmem>>, vector<8x1408xf32>
    %7 = vector.broadcast %5 : vector<1x1408xf32> to vector<8x1408xf32>
    %8 = arith.mulf %7, %6 : vector<8x1408xf32>
    %9 = arith.addf %3, %8 : vector<8x1408xf32>
    %10 = vector.extract_strided_slice %2 {offsets = [1, 0], sizes = [1, 1408], strides = [1, 1]} : vector<8x1408xf32> to vector<1x1408xf32>
    %c8 = arith.constant 8 : index
    %c0_7 = arith.constant 0 : index
    %11 = vector.load %arg3[%c8, %c0_7] : memref<44x1408xf32, #tpu.memory_space<vmem>>, vector<8x1408xf32>
    %12 = vector.broadcast %10 : vector<1x1408xf32> to vector<8x1408xf32>
    %13 = arith.mulf %12, %11 : vector<8x1408xf32>
    %14 = arith.addf %9, %13 : vector<8x1408xf32>
    %15 = vector.extract_strided_slice %2 {offsets = [2, 0], sizes = [1, 1408], strides = [1, 1]} : vector<8x1408xf32> to vector<1x1408xf32>
    %c16 = arith.constant 16 : index
    %c0_8 = arith.constant 0 : index
    %16 = vector.load %arg3[%c16, %c0_8] : memref<44x1408xf32, #tpu.memory_space<vmem>>, vector<8x1408xf32>
    %17 = vector.broadcast %15 : vector<1x1408xf32> to vector<8x1408xf32>
    %18 = arith.mulf %17, %16 : vector<8x1408xf32>
    %19 = arith.addf %14, %18 : vector<8x1408xf32>
    %20 = vector.extract_strided_slice %2 {offsets = [3, 0], sizes = [1, 1408], strides = [1, 1]} : vector<8x1408xf32> to vector<1x1408xf32>
    %c24 = arith.constant 24 : index
    %c0_9 = arith.constant 0 : index
    %21 = vector.load %arg3[%c24, %c0_9] : memref<44x1408xf32, #tpu.memory_space<vmem>>, vector<8x1408xf32>
    %22 = vector.broadcast %20 : vector<1x1408xf32> to vector<8x1408xf32>
    %23 = arith.mulf %22, %21 : vector<8x1408xf32>
    %24 = arith.addf %19, %23 : vector<8x1408xf32>
    %25 = vector.extract_strided_slice %24 {offsets = [0, 0], sizes = [4, 1408], strides = [1, 1]} : vector<8x1408xf32> to vector<4x1408xf32>
    %26 = vector.extract_strided_slice %24 {offsets = [4, 0], sizes = [4, 1408], strides = [1, 1]} : vector<8x1408xf32> to vector<4x1408xf32>
    %27 = vector.extract_strided_slice %26 {offsets = [0, 0], sizes = [2, 1408], strides = [1, 1]} : vector<4x1408xf32> to vector<2x1408xf32>
    %28 = vector.extract_strided_slice %4 {offsets = [2, 0], sizes = [2, 1408], strides = [1, 1]} : vector<4x1408xf32> to vector<2x1408xf32>
    %29 = arith.mulf %27, %28 : vector<2x1408xf32>
    %cst_10 = arith.constant 1.000000e-01 : f32
    %30 = vector.broadcast %cst_10 : f32 to vector<2x1408xf32>
    %31 = arith.mulf %29, %30 : vector<2x1408xf32>
    %32 = vector.extract_strided_slice %4 {offsets = [0, 0], sizes = [2, 1408], strides = [1, 1]} : vector<4x1408xf32> to vector<2x1408xf32>
    %33 = arith.addf %31, %32 : vector<2x1408xf32>
    %34 = vector.extract_strided_slice %26 {offsets = [2, 0], sizes = [2, 1408], strides = [1, 1]} : vector<4x1408xf32> to vector<2x1408xf32>
    %cst_11 = arith.constant 2.000000e-01 : f32
    %35 = vector.broadcast %cst_11 : f32 to vector<2x1408xf32>
    %36 = arith.mulf %34, %35 : vector<2x1408xf32>
    %37 = math.exp %36 : vector<2x1408xf32>
    %38 = vector.extract_strided_slice %4 {offsets = [2, 0], sizes = [2, 1408], strides = [1, 1]} : vector<4x1408xf32> to vector<2x1408xf32>
    %39 = arith.mulf %37, %38 : vector<2x1408xf32>
    %cst_12 = arith.constant 5.000000e-01 : f32
    %40 = vector.broadcast %cst_12 : f32 to vector<2x1408xf32>
    %41 = arith.mulf %39, %40 : vector<2x1408xf32>
    %42 = arith.subf %33, %41 : vector<2x1408xf32>
    %43 = arith.addf %33, %41 : vector<2x1408xf32>
    %44 = tpu.concatenate %25, %42, %43 in 0 : vector<4x1408xf32>, vector<2x1408xf32>, vector<2x1408xf32> -> vector<8x1408xf32>
    %c0_13 = arith.constant 0 : index
    %c0_14 = arith.constant 0 : index
    %c0_15 = arith.constant 0 : index
    %45 = vector.load %arg4[%c0_13, %c0_14, %c0_15] : memref<2x24x1408xf32, #tpu.memory_space<vmem>>, vector<1x8x1408xf32>
    %46 = vector.shape_cast %45 : vector<1x8x1408xf32> to vector<8x1408xf32>
    %47 = vector.shape_cast %44 : vector<8x1408xf32> to vector<1x8x1408xf32>
    tpu.vector_store %arg4[%c0_13, %c0_14, %c0_15], %47 {strides = array<i32>} : memref<2x24x1408xf32, #tpu.memory_space<vmem>>, vector<1x8x1408xf32>,
    %48 = tpu.concatenate %26, %4 in 0 : vector<4x1408xf32>, vector<4x1408xf32> -> vector<8x1408xf32>
    %c0_16 = arith.constant 0 : index
    %c8_17 = arith.constant 8 : index
    %c0_18 = arith.constant 0 : index
    %49 = vector.load %arg4[%c0_16, %c8_17, %c0_18] : memref<2x24x1408xf32, #tpu.memory_space<vmem>>, vector<1x8x1408xf32>
    %50 = vector.shape_cast %49 : vector<1x8x1408xf32> to vector<8x1408xf32>
    %51 = vector.shape_cast %48 : vector<8x1408xf32> to vector<1x8x1408xf32>
    tpu.vector_store %arg4[%c0_16, %c8_17, %c0_18], %51 {strides = array<i32>} : memref<2x24x1408xf32, #tpu.memory_space<vmem>>, vector<1x8x1408xf32>,
    %52 = tpu.concatenate %33, %39, %42, %43 in 0 : vector<2x1408xf32>, vector<2x1408xf32>, vector<2x1408xf32>, vector<2x1408xf32> -> vector<8x1408xf32>
    %c0_19 = arith.constant 0 : index
    %c16_20 = arith.constant 16 : index
    %c0_21 = arith.constant 0 : index
    %53 = vector.load %arg4[%c0_19, %c16_20, %c0_21] : memref<2x24x1408xf32, #tpu.memory_space<vmem>>, vector<1x8x1408xf32>
    %54 = vector.shape_cast %53 : vector<1x8x1408xf32> to vector<8x1408xf32>
    %55 = vector.shape_cast %52 : vector<8x1408xf32> to vector<1x8x1408xf32>
    tpu.vector_store %arg4[%c0_19, %c16_20, %c0_21], %55 {strides = array<i32>} : memref<2x24x1408xf32, #tpu.memory_space<vmem>>, vector<1x8x1408xf32>,
    %56 = vector.extract_strided_slice %2 {offsets = [4, 0], sizes = [1, 1408], strides = [1, 1]} : vector<8x1408xf32> to vector<1x1408xf32>
    %c0_22 = arith.constant 0 : index
    %c0_23 = arith.constant 0 : index
    %57 = vector.load %arg3[%c0_22, %c0_23] : memref<44x1408xf32, #tpu.memory_space<vmem>>, vector<8x1408xf32>
    %58 = vector.broadcast %56 : vector<1x1408xf32> to vector<8x1408xf32>
    %59 = arith.mulf %58, %57 : vector<8x1408xf32>
    %60 = arith.addf %3, %59 : vector<8x1408xf32>
    %61 = vector.extract_strided_slice %2 {offsets = [5, 0], sizes = [1, 1408], strides = [1, 1]} : vector<8x1408xf32> to vector<1x1408xf32>
    %c8_24 = arith.constant 8 : index
    %c0_25 = arith.constant 0 : index
    %62 = vector.load %arg3[%c8_24, %c0_25] : memref<44x1408xf32, #tpu.memory_space<vmem>>, vector<8x1408xf32>
    %63 = vector.broadcast %61 : vector<1x1408xf32> to vector<8x1408xf32>
    %64 = arith.mulf %63, %62 : vector<8x1408xf32>
    %65 = arith.addf %60, %64 : vector<8x1408xf32>
    %66 = vector.extract_strided_slice %2 {offsets = [6, 0], sizes = [1, 1408], strides = [1, 1]} : vector<8x1408xf32> to vector<1x1408xf32>
    %c16_26 = arith.constant 16 : index
    %c0_27 = arith.constant 0 : index
    %67 = vector.load %arg3[%c16_26, %c0_27] : memref<44x1408xf32, #tpu.memory_space<vmem>>, vector<8x1408xf32>
    %68 = vector.broadcast %66 : vector<1x1408xf32> to vector<8x1408xf32>
    %69 = arith.mulf %68, %67 : vector<8x1408xf32>
    %70 = arith.addf %65, %69 : vector<8x1408xf32>
    %71 = vector.extract_strided_slice %2 {offsets = [7, 0], sizes = [1, 1408], strides = [1, 1]} : vector<8x1408xf32> to vector<1x1408xf32>
    %c24_28 = arith.constant 24 : index
    %c0_29 = arith.constant 0 : index
    %72 = vector.load %arg3[%c24_28, %c0_29] : memref<44x1408xf32, #tpu.memory_space<vmem>>, vector<8x1408xf32>
    %73 = vector.broadcast %71 : vector<1x1408xf32> to vector<8x1408xf32>
    %74 = arith.mulf %73, %72 : vector<8x1408xf32>
    %75 = arith.addf %70, %74 : vector<8x1408xf32>
    %76 = vector.extract_strided_slice %75 {offsets = [0, 0], sizes = [4, 1408], strides = [1, 1]} : vector<8x1408xf32> to vector<4x1408xf32>
    %77 = vector.extract_strided_slice %75 {offsets = [4, 0], sizes = [4, 1408], strides = [1, 1]} : vector<8x1408xf32> to vector<4x1408xf32>
    %78 = vector.extract_strided_slice %77 {offsets = [0, 0], sizes = [2, 1408], strides = [1, 1]} : vector<4x1408xf32> to vector<2x1408xf32>
    %79 = vector.extract_strided_slice %4 {offsets = [2, 0], sizes = [2, 1408], strides = [1, 1]} : vector<4x1408xf32> to vector<2x1408xf32>
    %80 = arith.mulf %78, %79 : vector<2x1408xf32>
    %cst_30 = arith.constant 1.000000e-01 : f32
    %81 = vector.broadcast %cst_30 : f32 to vector<2x1408xf32>
    %82 = arith.mulf %80, %81 : vector<2x1408xf32>
    %83 = vector.extract_strided_slice %4 {offsets = [0, 0], sizes = [2, 1408], strides = [1, 1]} : vector<4x1408xf32> to vector<2x1408xf32>
    %84 = arith.addf %82, %83 : vector<2x1408xf32>
    %85 = vector.extract_strided_slice %77 {offsets = [2, 0], sizes = [2, 1408], strides = [1, 1]} : vector<4x1408xf32> to vector<2x1408xf32>
    %cst_31 = arith.constant 2.000000e-01 : f32
    %86 = vector.broadcast %cst_31 : f32 to vector<2x1408xf32>
    %87 = arith.mulf %85, %86 : vector<2x1408xf32>
    %88 = math.exp %87 : vector<2x1408xf32>
    %89 = vector.extract_strided_slice %4 {offsets = [2, 0], sizes = [2, 1408], strides = [1, 1]} : vector<4x1408xf32> to vector<2x1408xf32>
    %90 = arith.mulf %88, %89 : vector<2x1408xf32>
    %cst_32 = arith.constant 5.000000e-01 : f32
    %91 = vector.broadcast %cst_32 : f32 to vector<2x1408xf32>
    %92 = arith.mulf %90, %91 : vector<2x1408xf32>
    %93 = arith.subf %84, %92 : vector<2x1408xf32>
    %94 = arith.addf %84, %92 : vector<2x1408xf32>
    %95 = tpu.concatenate %76, %93, %94 in 0 : vector<4x1408xf32>, vector<2x1408xf32>, vector<2x1408xf32> -> vector<8x1408xf32>
    %c1 = arith.constant 1 : index
    %c0_33 = arith.constant 0 : index
    %c0_34 = arith.constant 0 : index
    %96 = vector.load %arg4[%c1, %c0_33, %c0_34] : memref<2x24x1408xf32, #tpu.memory_space<vmem>>, vector<1x8x1408xf32>
    %97 = vector.shape_cast %96 : vector<1x8x1408xf32> to vector<8x1408xf32>
    %98 = vector.shape_cast %95 : vector<8x1408xf32> to vector<1x8x1408xf32>
    tpu.vector_store %arg4[%c1, %c0_33, %c0_34], %98 {strides = array<i32>} : memref<2x24x1408xf32, #tpu.memory_space<vmem>>, vector<1x8x1408xf32>,
    %99 = tpu.concatenate %77, %4 in 0 : vector<4x1408xf32>, vector<4x1408xf32> -> vector<8x1408xf32>
    %c1_35 = arith.constant 1 : index
    %c8_36 = arith.constant 8 : index
    %c0_37 = arith.constant 0 : index
    %100 = vector.load %arg4[%c1_35, %c8_36, %c0_37] : memref<2x24x1408xf32, #tpu.memory_space<vmem>>, vector<1x8x1408xf32>
    %101 = vector.shape_cast %100 : vector<1x8x1408xf32> to vector<8x1408xf32>
    %102 = vector.shape_cast %99 : vector<8x1408xf32> to vector<1x8x1408xf32>
    tpu.vector_store %arg4[%c1_35, %c8_36, %c0_37], %102 {strides = array<i32>} : memref<2x24x1408xf32, #tpu.memory_space<vmem>>, vector<1x8x1408xf32>,
    %103 = tpu.concatenate %84, %90, %93, %94 in 0 : vector<2x1408xf32>, vector<2x1408xf32>, vector<2x1408xf32>, vector<2x1408xf32> -> vector<8x1408xf32>
    %c1_38 = arith.constant 1 : index
    %c16_39 = arith.constant 16 : index
    %c0_40 = arith.constant 0 : index
    %104 = vector.load %arg4[%c1_38, %c16_39, %c0_40] : memref<2x24x1408xf32, #tpu.memory_space<vmem>>, vector<1x8x1408xf32>
    %105 = vector.shape_cast %104 : vector<1x8x1408xf32> to vector<8x1408xf32>
    %106 = vector.shape_cast %103 : vector<8x1408xf32> to vector<1x8x1408xf32>
    tpu.vector_store %arg4[%c1_38, %c16_39, %c0_40], %106 {strides = array<i32>} : memref<2x24x1408xf32, #tpu.memory_space<vmem>>, vector<1x8x1408xf32>,
    return
  }
  func.func @transform_0(%arg0: i32) -> (i32, i32) {
    %c0_i32 = arith.constant 0 : i32
    %c0_i32_0 = arith.constant 0 : i32
    %c0_i32_1 = arith.constant 0 : i32
    return %c0_i32, %c0_i32_0 : i32, i32
  }
  func.func @transform_1(%arg0: i32) -> (i32, i32) {
    %c0_i32 = arith.constant 0 : i32
    %c0_i32_0 = arith.constant 0 : i32
    %c0_i32_1 = arith.constant 0 : i32
    return %c0_i32, %c0_i32_0 : i32, i32
  }
  func.func @transform_2(%arg0: i32) -> (i32, i32) {
    %c0_i32 = arith.constant 0 : i32
    %c0_i32_0 = arith.constant 0 : i32
    %c0_i32_1 = arith.constant 0 : i32
    return %c0_i32, %c0_i32_0 : i32, i32
  }
  func.func @transform_3(%arg0: i32) -> (i32, i32, i32) {
    %c0_i32 = arith.constant 0 : i32
    %c0_i32_0 = arith.constant 0 : i32
    %c0_i32_1 = arith.constant 0 : i32
    %c0_i32_2 = arith.constant 0 : i32
    return %c0_i32, %c0_i32_0, %c0_i32_1 : i32, i32, i32
  }
}

</mosaic_0001>

<bundles_post_ra>
// kernel: ssd_forward_and_decode.1
= control target key start
LH: loop header
LB: loop body
LE: loop exit
PB: predicated region body
PF: predicated region fallthrough
CT: control target
= control target key end

     0   :  { %8 = vsyncpa [#allocation3], 0  ;;  %s3257_s0 = inlined_call_operand.vmem [shape: f32[8,256], index: 0, kind: input, shape index: {}]   ;;  %s3258_s1 = inlined_call_operand.hbm [shape: f32[256,1408], index: 1, kind: input, shape index: {}]   ;;  %s3259_s2 = inlined_call_operand.hbm [shape: f32[44,1408], index: 2, kind: input, shape index: {}]   ;;  %s3260_s3 = inlined_call_operand.hbm [shape: f32[2,24,1408], index: 3, kind: output, shape index: {}]  }
   0x1   :  { %9 = vsyncpa [#allocation6], 0 }
   0x2   :  { %10 = vsyncpa [#allocation4], 0  ;;  %s2435_s12 = smov [#allocation2]  }
   0x3   :  { %s18_s13 = sshll.u32 %s2435_s12, 4  ;;  %s19_s13 = int_to_ptr.vmem [resolvable:$true] %s18_s13 }
   0x4   :  { %s2377_s14 = scalar_lea.vmem %s19_s13, 45056  ;;  %p2382_p1 = scmp.lt.s32.totalorder %s19_s13, %s19_s13 }
   0x5   :  { %p2378_p0 = scmp.ne.s32.totalorder %s19_s13, %s2377_s14  ;;  %p2383_p2 = scmp.lt.s32.totalorder %s2377_s14, %s2377_s14 }
   0x7   :  { %p2384_p3 = por %p2383_p2, %p2382_p1 }
   0x9   :  { %p2385_p4 = pnand %p2384_p3, %p2378_p0 }
   0xb   :  { %2388 = shalt.err (!%p2385_p4)
}
   0xc   :  { %s2436_s15 = smov 1408   ;;  %s2437_s16 = smov 88  }
   0xd   :  { %24 = dma.hbm_to_vmem [thread:$0]  %s3258_s1, 45056, %s19_s13, [#allocation3], %s2436_s15, %s2436_s15, %s2437_s16  }
   0xe   :  { %s2438_s19 = smov [#allocation5]  }
   0xf   :  { %s30_s20 = sshll.u32 %s2438_s19, 4  ;;  %s31_s20 = int_to_ptr.vmem [resolvable:$true] %s30_s20 }
  0x10   :  { %s2397_s21 = scalar_lea.vmem %s31_s20, 8448  ;;  %p2402_p6 = scmp.lt.s32.totalorder %s31_s20, %s31_s20 }
  0x11   :  { %p2398_p5 = scmp.ne.s32.totalorder %s31_s20, %s2397_s21  ;;  %p2403_p7 = scmp.lt.s32.totalorder %s2397_s21, %s2397_s21 }
  0x13   :  { %p2404_p8 = por %p2403_p7, %p2402_p6 }
  0x15   :  { %p2405_p9 = pnand %p2404_p8, %p2398_p5 }
  0x17   :  { %2408 = shalt.err (!%p2405_p9)
}
  0x18   :  { %36 = dma.hbm_to_vmem [thread:$0]  %s3259_s2, 8448, %s31_s20, [#allocation6], %s2436_s15, %s2436_s15, %s2437_s16  }
  0x19   :  { %2429 = dma.done.wait [#allocation3], 45056  }
  0x1a   :  { %2430 = vsyncadd [#allocation3], 4294922240 }
  0x1b   :  { %2431 = dma.done.wait [#allocation6], 8448  }
  0x1c   :  { %2432 = vsyncadd [#allocation6], 4294958848  ;;  %v211_v0 = vld [vmem:[#allocation2 + $0x530] sm:$0xff]  ;;  %v213_v1 = vld [vmem:[#allocation2 + $0x540] sm:$0xff]  ;;  %vm1383_vm0 = vcmask 1043456   ;;  %vm1539_vm1 = vcmask 1041408  }
  0x1d   :  { %v210_v2 = vld [vmem:[#allocation2 + $0x528] sm:$0xff]  ;;  %397 = vmatprep.subr.mxu0 %v211_v0  ;;  %468 = vmatprep.subr.mxu1 %v213_v1  ;;  %v212_v3 = vld [vmem:[#allocation2 + $0x538] sm:$0xff]  ;;  %v199_v6 = vld [vmem:[#allocation2 + $0x4d0] sm:$0xff]  ;;  %vm1395_vm2 = vcmask 1045504  }
  0x1e   :  { %v200_v4 = vld [vmem:[#allocation2 + $0x4d8] sm:$0xff]  ;;  %v202_v5 = vld [vmem:[#allocation2 + $0x4e8] sm:$0xff]  ;;  %398 = vmatpush1.msra.mxu0 %v210_v2  ;;  %469 = vmatpush1.msra.mxu1 %v212_v3  ;;  %v201_v7 = vld [vmem:[#allocation2 + $0x4e0] sm:$0xff] }
  0x1f   :  { %v189_v8 = vld [vmem:[#allocation2 + $0x480] sm:$0xff]  ;;  %399 = vmatprep.subr.mxu0 %v200_v4  ;;  %470 = vmatprep.subr.mxu1 %v202_v5  ;;  %v191_v9 = vld [vmem:[#allocation2 + $0x490] sm:$0xff]  ;;  %v188_v10 = vld [vmem:[#allocation2 + $0x478] sm:$0xff] }
  0x20   :  { %v190_v11 = vld [vmem:[#allocation2 + $0x488] sm:$0xff]  ;;  %400 = vmatpush1.msra.mxu0 %v199_v6  ;;  %471 = vmatpush1.msra.mxu1 %v201_v7  ;;  %v180_v13 = vld [vmem:[#allocation2 + $0x438] sm:$0xff]  ;;  %v177_v14 = vld [vmem:[#allocation2 + $0x420] sm:$0xff] }
  0x21   :  { %v178_v12 = vld [vmem:[#allocation2 + $0x428] sm:$0xff]  ;;  %401 = vmatprep.subr.mxu0 %v189_v8  ;;  %472 = vmatprep.subr.mxu1 %v191_v9  ;;  %v179_v15 = vld [vmem:[#allocation2 + $0x430] sm:$0xff]  ;;  %v169_v17 = vld [vmem:[#allocation2 + $0x3e0] sm:$0xff] }
  0x22   :  { %402 = vmatpush1.msra.mxu0 %v188_v10  ;;  %473 = vmatpush1.msra.mxu1 %v190_v11  ;;  %v167_v16 = vld [vmem:[#allocation2 + $0x3d0] sm:$0xff]  ;;  %v166_v18 = vld [vmem:[#allocation2 + $0x3c8] sm:$0xff]  ;;  %v168_v19 = vld [vmem:[#allocation2 + $0x3d8] sm:$0xff] }
  0x23   :  { %403 = vmatprep.subr.mxu0 %v178_v12  ;;  %474 = vmatprep.subr.mxu1 %v180_v13  ;;  %v156_v20 = vld [vmem:[#allocation2 + $0x378] sm:$0xff]  ;;  %v158_v21 = vld [vmem:[#allocation2 + $0x388] sm:$0xff]  ;;  %v155_v22 = vld [vmem:[#allocation2 + $0x370] sm:$0xff] }
  0x24   :  { %404 = vmatpush1.msra.mxu0 %v177_v14  ;;  %475 = vmatpush1.msra.mxu1 %v179_v15  ;;  %v157_v23 = vld [vmem:[#allocation2 + $0x380] sm:$0xff]  ;;  %v147_v25 = vld [vmem:[#allocation2 + $0x330] sm:$0xff]  ;;  %v144_v26 = vld [vmem:[#allocation2 + $0x318] sm:$0xff] }
  0x25   :  { %405 = vmatprep.subr.mxu0 %v167_v16  ;;  %476 = vmatprep.subr.mxu1 %v169_v17  ;;  %v145_v24 = vld [vmem:[#allocation2 + $0x320] sm:$0xff]  ;;  %v146_v27 = vld [vmem:[#allocation2 + $0x328] sm:$0xff]  ;;  %v136_v29 = vld [vmem:[#allocation2 + $0x2d8] sm:$0xff] }
  0x26   :  { %406 = vmatpush1.msra.mxu0 %v166_v18  ;;  %477 = vmatpush1.msra.mxu1 %v168_v19  ;;  %v134_v28 = vld [vmem:[#allocation2 + $0x2c8] sm:$0xff]  ;;  %v133_v30 = vld [vmem:[#allocation2 + $0x2c0] sm:$0xff]  ;;  %v135_v31 = vld [vmem:[#allocation2 + $0x2d0] sm:$0xff] }
  0x27   :  { %407 = vmatprep.subr.mxu0 %v156_v20  ;;  %478 = vmatprep.subr.mxu1 %v158_v21  ;;  %v123_v32 = vld [vmem:[#allocation2 + $0x270] sm:$0xff]  ;;  %v125_v33 = vld [vmem:[#allocation2 + $0x280] sm:$0xff]  ;;  %v122_v34 = vld [vmem:[#allocation2 + $0x268] sm:$0xff] }
  0x28   :  { %408 = vmatpush1.msra.mxu0 %v155_v22  ;;  %479 = vmatpush1.msra.mxu1 %v157_v23  ;;  %v124_v35 = vld [vmem:[#allocation2 + $0x278] sm:$0xff]  ;;  %v114_v37 = vld [vmem:[#allocation2 + $0x228] sm:$0xff]  ;;  %v111_v38 = vld [vmem:[#allocation2 + $0x210] sm:$0xff] }
  0x29   :  { %409 = vmatprep.subr.mxu0 %v145_v24  ;;  %480 = vmatprep.subr.mxu1 %v147_v25  ;;  %v112_v36 = vld [vmem:[#allocation2 + $0x218] sm:$0xff]  ;;  %v113_v39 = vld [vmem:[#allocation2 + $0x220] sm:$0xff]  ;;  %v103_v41 = vld [vmem:[#allocation2 + $0x1d0] sm:$0xff] }
  0x2a   :  { %410 = vmatpush1.msra.mxu0 %v144_v26  ;;  %481 = vmatpush1.msra.mxu1 %v146_v27  ;;  %v101_v40 = vld [vmem:[#allocation2 + $0x1c0] sm:$0xff]  ;;  %v100_v42 = vld [vmem:[#allocation2 + $0x1b8] sm:$0xff]  ;;  %v102_v43 = vld [vmem:[#allocation2 + $0x1c8] sm:$0xff] }
  0x2b   :  { %411 = vmatprep.subr.mxu0 %v134_v28  ;;  %482 = vmatprep.subr.mxu1 %v136_v29  ;;  %v90_v44 = vld [vmem:[#allocation2 + $0x168] sm:$0xff]  ;;  %v92_v45 = vld [vmem:[#allocation2 + $0x178] sm:$0xff]  ;;  %v89_v46 = vld [vmem:[#allocation2 + $0x160] sm:$0xff] }
  0x2c   :  { %412 = vmatpush1.msra.mxu0 %v133_v30  ;;  %483 = vmatpush1.msra.mxu1 %v135_v31  ;;  %v91_v47 = vld [vmem:[#allocation2 + $0x170] sm:$0xff]  ;;  %v81_v49 = vld [vmem:[#allocation2 + $0x120] sm:$0xff]  ;;  %v78_v50 = vld [vmem:[#allocation2 + $0x108] sm:$0xff] }
  0x2d   :  { %413 = vmatprep.subr.mxu0 %v123_v32  ;;  %484 = vmatprep.subr.mxu1 %v125_v33  ;;  %v79_v48 = vld [vmem:[#allocation2 + $0x110] sm:$0xff]  ;;  %v80_v51 = vld [vmem:[#allocation2 + $0x118] sm:$0xff]  ;;  %v70_v53 = vld [vmem:[#allocation2 + $0xc8] sm:$0xff] }
  0x2e   :  { %414 = vmatpush1.msra.mxu0 %v122_v34  ;;  %485 = vmatpush1.msra.mxu1 %v124_v35  ;;  %v68_v52 = vld [vmem:[#allocation2 + $0xb8] sm:$0xff]  ;;  %v67_v54 = vld [vmem:[#allocation2 + $0xb0] sm:$0xff]  ;;  %v69_v55 = vld [vmem:[#allocation2 + $0xc0] sm:$0xff] }
  0x2f   :  { %415 = vmatprep.subr.mxu0 %v112_v36  ;;  %486 = vmatprep.subr.mxu1 %v114_v37  ;;  %v57_v56 = vld [vmem:[#allocation2 + $0x60] sm:$0xff]  ;;  %v59_v57 = vld [vmem:[#allocation2 + $0x70] sm:$0xff]  ;;  %v56_v58 = vld [vmem:[#allocation2 + $0x58] sm:$0xff] }
  0x30   :  { %416 = vmatpush1.msra.mxu0 %v111_v38  ;;  %487 = vmatpush1.msra.mxu1 %v113_v39  ;;  %v58_v59 = vld [vmem:[#allocation2 + $0x68] sm:$0xff]  ;;  %v48_v61 = vld [vmem:[#allocation2 + $0x18] sm:$0xff]  ;;  %v45_v62 = vld [vmem:[#allocation2] sm:$0xff] }
  0x31   :  { %417 = vmatprep.subr.mxu0 %v101_v40  ;;  %488 = vmatprep.subr.mxu1 %v103_v41  ;;  %v46_v60 = vld [vmem:[#allocation2 + $0x8] sm:$0xff]  ;;  %v47_v63 = vld [vmem:[#allocation2 + $0x10] sm:$0xff]  ;;  %v389_v1 = vld [vmem:[#allocation2 + $0xac0] sm:$0xff] }
  0x32   :  { %418 = vmatpush1.msra.mxu0 %v100_v42  ;;  %489 = vmatpush1.msra.mxu1 %v102_v43  ;;  %v387_v0 = vld [vmem:[#allocation2 + $0xab0] sm:$0xff]  ;;  %v386_v2 = vld [vmem:[#allocation2 + $0xaa8] sm:$0xff]  ;;  %v388_v3 = vld [vmem:[#allocation2 + $0xab8] sm:$0xff] }
  0x33   :  { %419 = vmatprep.subr.mxu0 %v90_v44  ;;  %490 = vmatprep.subr.mxu1 %v92_v45  ;;  %v376_v4 = vld [vmem:[#allocation2 + $0xa58] sm:$0xff]  ;;  %v378_v5 = vld [vmem:[#allocation2 + $0xa68] sm:$0xff]  ;;  %v375_v6 = vld [vmem:[#allocation2 + $0xa50] sm:$0xff] }
  0x34   :  { %420 = vmatpush1.msra.mxu0 %v89_v46  ;;  %491 = vmatpush1.msra.mxu1 %v91_v47  ;;  %v377_v7 = vld [vmem:[#allocation2 + $0xa60] sm:$0xff]  ;;  %v367_v9 = vld [vmem:[#allocation2 + $0xa10] sm:$0xff]  ;;  %v364_v10 = vld [vmem:[#allocation2 + $0x9f8] sm:$0xff] }
  0x35   :  { %421 = vmatprep.subr.mxu0 %v79_v48  ;;  %492 = vmatprep.subr.mxu1 %v81_v49  ;;  %v365_v8 = vld [vmem:[#allocation2 + $0xa00] sm:$0xff]  ;;  %v366_v11 = vld [vmem:[#allocation2 + $0xa08] sm:$0xff]  ;;  %v356_v13 = vld [vmem:[#allocation2 + $0x9b8] sm:$0xff] }
  0x36   :  { %422 = vmatpush1.msra.mxu0 %v78_v50  ;;  %493 = vmatpush1.msra.mxu1 %v80_v51  ;;  %v354_v12 = vld [vmem:[#allocation2 + $0x9a8] sm:$0xff]  ;;  %v353_v14 = vld [vmem:[#allocation2 + $0x9a0] sm:$0xff]  ;;  %v355_v15 = vld [vmem:[#allocation2 + $0x9b0] sm:$0xff] }
  0x37   :  { %423 = vmatprep.subr.mxu0 %v68_v52  ;;  %494 = vmatprep.subr.mxu1 %v70_v53  ;;  %v343_v16 = vld [vmem:[#allocation2 + $0x950] sm:$0xff]  ;;  %v345_v17 = vld [vmem:[#allocation2 + $0x960] sm:$0xff]  ;;  %v342_v18 = vld [vmem:[#allocation2 + $0x948] sm:$0xff] }
  0x38   :  { %424 = vmatpush1.msra.mxu0 %v67_v54  ;;  %495 = vmatpush1.msra.mxu1 %v69_v55  ;;  %v344_v19 = vld [vmem:[#allocation2 + $0x958] sm:$0xff]  ;;  %v334_v21 = vld [vmem:[#allocation2 + $0x908] sm:$0xff]  ;;  %v331_v22 = vld [vmem:[#allocation2 + $0x8f0] sm:$0xff] }
  0x39   :  { %425 = vmatprep.subr.mxu0 %v57_v56  ;;  %496 = vmatprep.subr.mxu1 %v59_v57  ;;  %v332_v20 = vld [vmem:[#allocation2 + $0x8f8] sm:$0xff]  ;;  %v333_v23 = vld [vmem:[#allocation2 + $0x900] sm:$0xff]  ;;  %v323_v25 = vld [vmem:[#allocation2 + $0x8b0] sm:$0xff] }
  0x3a   :  { %426 = vmatpush1.msra.mxu0 %v56_v58  ;;  %497 = vmatpush1.msra.mxu1 %v58_v59  ;;  %v321_v24 = vld [vmem:[#allocation2 + $0x8a0] sm:$0xff]  ;;  %v320_v26 = vld [vmem:[#allocation2 + $0x898] sm:$0xff]  ;;  %v322_v27 = vld [vmem:[#allocation2 + $0x8a8] sm:$0xff] }
  0x3b   :  { %427 = vmatprep.subr.mxu0 %v46_v60  ;;  %498 = vmatprep.subr.mxu1 %v48_v61  ;;  %v310_v28 = vld [vmem:[#allocation2 + $0x848] sm:$0xff]  ;;  %v312_v29 = vld [vmem:[#allocation2 + $0x858] sm:$0xff]  ;;  %v309_v30 = vld [vmem:[#allocation2 + $0x840] sm:$0xff] }
  0x3c   :  { %428 = vmatpush1.msra.mxu0 %v45_v62  ;;  %499 = vmatpush1.msra.mxu1 %v47_v63  ;;  %v311_v31 = vld [vmem:[#allocation2 + $0x850] sm:$0xff]  ;;  %v301_v33 = vld [vmem:[#allocation2 + $0x800] sm:$0xff]  ;;  %v298_v34 = vld [vmem:[#allocation2 + $0x7e8] sm:$0xff] }
  0x3d   :  { %429 = vmatprep.subr.mxu0 %v387_v0  ;;  %500 = vmatprep.subr.mxu1 %v389_v1  ;;  %v299_v32 = vld [vmem:[#allocation2 + $0x7f0] sm:$0xff]  ;;  %v300_v35 = vld [vmem:[#allocation2 + $0x7f8] sm:$0xff]  ;;  %v290_v37 = vld [vmem:[#allocation2 + $0x7a8] sm:$0xff] }
  0x3e   :  { %430 = vmatpush2.msra.mxu0 %v386_v2  ;;  %501 = vmatpush2.msra.mxu1 %v388_v3  ;;  %v288_v36 = vld [vmem:[#allocation2 + $0x798] sm:$0xff]  ;;  %v287_v38 = vld [vmem:[#allocation2 + $0x790] sm:$0xff]  ;;  %v289_v39 = vld [vmem:[#allocation2 + $0x7a0] sm:$0xff] }
  0x3f   :  { %431 = vmatprep.subr.mxu0 %v376_v4  ;;  %502 = vmatprep.subr.mxu1 %v378_v5  ;;  %v277_v40 = vld [vmem:[#allocation2 + $0x740] sm:$0xff]  ;;  %v279_v41 = vld [vmem:[#allocation2 + $0x750] sm:$0xff]  ;;  %v276_v42 = vld [vmem:[#allocation2 + $0x738] sm:$0xff] }
  0x40   :  { %432 = vmatpush2.msra.mxu0 %v375_v6  ;;  %503 = vmatpush2.msra.mxu1 %v377_v7  ;;  %v278_v43 = vld [vmem:[#allocation2 + $0x748] sm:$0xff]  ;;  %v268_v45 = vld [vmem:[#allocation2 + $0x6f8] sm:$0xff]  ;;  %v265_v46 = vld [vmem:[#allocation2 + $0x6e0] sm:$0xff] }
  0x41   :  { %433 = vmatprep.subr.mxu0 %v365_v8  ;;  %504 = vmatprep.subr.mxu1 %v367_v9  ;;  %v266_v44 = vld [vmem:[#allocation2 + $0x6e8] sm:$0xff]  ;;  %v267_v47 = vld [vmem:[#allocation2 + $0x6f0] sm:$0xff]  ;;  %v257_v49 = vld [vmem:[#allocation2 + $0x6a0] sm:$0xff] }
  0x42   :  { %434 = vmatpush2.msra.mxu0 %v364_v10  ;;  %505 = vmatpush2.msra.mxu1 %v366_v11  ;;  %v255_v48 = vld [vmem:[#allocation2 + $0x690] sm:$0xff]  ;;  %v254_v50 = vld [vmem:[#allocation2 + $0x688] sm:$0xff]  ;;  %v256_v51 = vld [vmem:[#allocation2 + $0x698] sm:$0xff] }
  0x43   :  { %435 = vmatprep.subr.mxu0 %v354_v12  ;;  %506 = vmatprep.subr.mxu1 %v356_v13  ;;  %v244_v52 = vld [vmem:[#allocation2 + $0x638] sm:$0xff]  ;;  %v246_v53 = vld [vmem:[#allocation2 + $0x648] sm:$0xff]  ;;  %v243_v54 = vld [vmem:[#allocation2 + $0x630] sm:$0xff] }
  0x44   :  { %436 = vmatpush2.msra.mxu0 %v353_v14  ;;  %507 = vmatpush2.msra.mxu1 %v355_v15  ;;  %v245_v55 = vld [vmem:[#allocation2 + $0x640] sm:$0xff]  ;;  %v235_v57 = vld [vmem:[#allocation2 + $0x5f0] sm:$0xff]  ;;  %v232_v58 = vld [vmem:[#allocation2 + $0x5d8] sm:$0xff] }
  0x45   :  { %437 = vmatprep.subr.mxu0 %v343_v16  ;;  %508 = vmatprep.subr.mxu1 %v345_v17  ;;  %v233_v56 = vld [vmem:[#allocation2 + $0x5e0] sm:$0xff]  ;;  %v234_v59 = vld [vmem:[#allocation2 + $0x5e8] sm:$0xff]  ;;  %v224_v61 = vld [vmem:[#allocation2 + $0x598] sm:$0xff] }
  0x46   :  { %438 = vmatpush2.msra.mxu0 %v342_v18  ;;  %509 = vmatpush2.msra.mxu1 %v344_v19  ;;  %v222_v60 = vld [vmem:[#allocation2 + $0x588] sm:$0xff]  ;;  %v221_v62 = vld [vmem:[#allocation2 + $0x580] sm:$0xff]  ;;  %v223_v0 = vld [vmem:[#allocation2 + $0x590] sm:$0xff] }
  0x47   :  { %439 = vmatprep.subr.mxu0 %v332_v20  ;;  %510 = vmatprep.subr.mxu1 %v334_v21  ;;  %v2475_v63 = vld [vmem:[%s3257_s0 + $0x8] sm:$0xff]  ;;  %v2480_v1 = vld [vmem:[%s3257_s0] sm:$0xff]  ;;  %v215_v2 = vld [vmem:[#allocation2 + $0x550] sm:$0xff]  ;;  %s2439_s0 = smov [#allocation7]  }
  0x48   :  { %440 = vmatpush2.msra.mxu0 %v331_v22  ;;  %511 = vmatpush2.msra.mxu1 %v333_v23  ;;  %v217_v3 = vld [vmem:[#allocation2 + $0x560] sm:$0xff]  ;;  %v214_v4 = vld [vmem:[#allocation2 + $0x548] sm:$0xff]  ;;  %v216_v5 = vld [vmem:[#allocation2 + $0x558] sm:$0xff]  ;;  %s2272_s26 = sshll.u32 %s2439_s0, 4  ;;  %s2273_s26 = int_to_ptr.vmem [resolvable:$true] %s2272_s26 }
  0x49   :  { %441 = vmatprep.subr.mxu0 %v321_v24  ;;  %512 = vmatprep.subr.mxu1 %v323_v25  ;;  %v204_v6 = vld [vmem:[#allocation2 + $0x4f8] sm:$0xff]  ;;  %v206_v7 = vld [vmem:[#allocation2 + $0x508] sm:$0xff]  ;;  %v203_v8 = vld [vmem:[#allocation2 + $0x4f0] sm:$0xff]  ;;  %s2409_s27 = scalar_lea.vmem %s2273_s26, 8448  ;;  %p2414_p11 = scmp.lt.s32.totalorder %s2273_s26, %s2273_s26 }
  0x4a   :  { %442 = vmatpush2.msra.mxu0 %v320_v26  ;;  %513 = vmatpush2.msra.mxu1 %v322_v27  ;;  %v205_v9 = vld [vmem:[#allocation2 + $0x500] sm:$0xff]  ;;  %v195_v11 = vld [vmem:[#allocation2 + $0x4b0] sm:$0xff]  ;;  %v192_v12 = vld [vmem:[#allocation2 + $0x498] sm:$0xff]  ;;  %p2410_p10 = scmp.ne.s32.totalorder %s2273_s26, %s2409_s27  ;;  %p2415_p12 = scmp.lt.s32.totalorder %s2409_s27, %s2409_s27 }
  0x4b   :  { %443 = vmatprep.subr.mxu0 %v310_v28  ;;  %514 = vmatprep.subr.mxu1 %v312_v29  ;;  %v193_v10 = vld [vmem:[#allocation2 + $0x4a0] sm:$0xff]  ;;  %v194_v13 = vld [vmem:[#allocation2 + $0x4a8] sm:$0xff]  ;;  %v184_v15 = vld [vmem:[#allocation2 + $0x458] sm:$0xff] }
  0x4c   :  { %444 = vmatpush2.msra.mxu0 %v309_v30  ;;  %515 = vmatpush2.msra.mxu1 %v311_v31  ;;  %v182_v14 = vld [vmem:[#allocation2 + $0x448] sm:$0xff]  ;;  %v181_v16 = vld [vmem:[#allocation2 + $0x440] sm:$0xff]  ;;  %v183_v17 = vld [vmem:[#allocation2 + $0x450] sm:$0xff]  ;;  %p2416_p13 = por %p2415_p12, %p2414_p11 }
  0x4d   :  { %445 = vmatprep.subr.mxu0 %v299_v32  ;;  %516 = vmatprep.subr.mxu1 %v301_v33  ;;  %v171_v18 = vld [vmem:[#allocation2 + $0x3f0] sm:$0xff]  ;;  %v173_v19 = vld [vmem:[#allocation2 + $0x400] sm:$0xff]  ;;  %v170_v20 = vld [vmem:[#allocation2 + $0x3e8] sm:$0xff] }
  0x4e   :  { %446 = vmatpush2.msra.mxu0 %v298_v34  ;;  %517 = vmatpush2.msra.mxu1 %v300_v35  ;;  %v172_v21 = vld [vmem:[#allocation2 + $0x3f8] sm:$0xff]  ;;  %v162_v23 = vld [vmem:[#allocation2 + $0x3a8] sm:$0xff]  ;;  %v159_v24 = vld [vmem:[#allocation2 + $0x390] sm:$0xff]  ;;  %p2417_p0 = pnand %p2416_p13, %p2410_p10 }
  0x4f   :  { %447 = vmatprep.subr.mxu0 %v288_v36  ;;  %518 = vmatprep.subr.mxu1 %v290_v37  ;;  %v160_v22 = vld [vmem:[#allocation2 + $0x398] sm:$0xff]  ;;  %v161_v25 = vld [vmem:[#allocation2 + $0x3a0] sm:$0xff]  ;;  %v151_v27 = vld [vmem:[#allocation2 + $0x350] sm:$0xff] }
  0x50   :  { %448 = vmatpush2.msra.mxu0 %v287_v38  ;;  %519 = vmatpush2.msra.mxu1 %v289_v39  ;;  %v149_v26 = vld [vmem:[#allocation2 + $0x340] sm:$0xff]  ;;  %v148_v28 = vld [vmem:[#allocation2 + $0x338] sm:$0xff]  ;;  %v150_v29 = vld [vmem:[#allocation2 + $0x348] sm:$0xff] }
  0x51   :  { %449 = vmatprep.subr.mxu0 %v277_v40  ;;  %520 = vmatprep.subr.mxu1 %v279_v41  ;;  %v138_v30 = vld [vmem:[#allocation2 + $0x2e8] sm:$0xff]  ;;  %v140_v31 = vld [vmem:[#allocation2 + $0x2f8] sm:$0xff]  ;;  %v137_v32 = vld [vmem:[#allocation2 + $0x2e0] sm:$0xff] }
  0x52   :  { %450 = vmatpush2.msra.mxu0 %v276_v42  ;;  %521 = vmatpush2.msra.mxu1 %v278_v43  ;;  %v139_v33 = vld [vmem:[#allocation2 + $0x2f0] sm:$0xff]  ;;  %v129_v35 = vld [vmem:[#allocation2 + $0x2a0] sm:$0xff]  ;;  %v126_v36 = vld [vmem:[#allocation2 + $0x288] sm:$0xff] }
  0x53   :  { %451 = vmatprep.subr.mxu0 %v266_v44  ;;  %522 = vmatprep.subr.mxu1 %v268_v45  ;;  %v127_v34 = vld [vmem:[#allocation2 + $0x290] sm:$0xff]  ;;  %v128_v37 = vld [vmem:[#allocation2 + $0x298] sm:$0xff]  ;;  %v118_v39 = vld [vmem:[#allocation2 + $0x248] sm:$0xff] }
  0x54   :  { %452 = vmatpush2.msra.mxu0 %v265_v46  ;;  %523 = vmatpush2.msra.mxu1 %v267_v47  ;;  %v116_v38 = vld [vmem:[#allocation2 + $0x238] sm:$0xff]  ;;  %v115_v40 = vld [vmem:[#allocation2 + $0x230] sm:$0xff]  ;;  %v117_v41 = vld [vmem:[#allocation2 + $0x240] sm:$0xff] }
  0x55   :  { %453 = vmatprep.subr.mxu0 %v255_v48  ;;  %524 = vmatprep.subr.mxu1 %v257_v49  ;;  %v105_v42 = vld [vmem:[#allocation2 + $0x1e0] sm:$0xff]  ;;  %v107_v43 = vld [vmem:[#allocation2 + $0x1f0] sm:$0xff]  ;;  %v104_v44 = vld [vmem:[#allocation2 + $0x1d8] sm:$0xff] }
  0x56   :  { %454 = vmatpush2.msra.mxu0 %v254_v50  ;;  %525 = vmatpush2.msra.mxu1 %v256_v51  ;;  %v106_v45 = vld [vmem:[#allocation2 + $0x1e8] sm:$0xff]  ;;  %v96_v47 = vld [vmem:[#allocation2 + $0x198] sm:$0xff]  ;;  %v93_v48 = vld [vmem:[#allocation2 + $0x180] sm:$0xff] }
  0x57   :  { %455 = vmatprep.subr.mxu0 %v244_v52  ;;  %526 = vmatprep.subr.mxu1 %v246_v53  ;;  %v94_v46 = vld [vmem:[#allocation2 + $0x188] sm:$0xff]  ;;  %v95_v49 = vld [vmem:[#allocation2 + $0x190] sm:$0xff]  ;;  %v85_v51 = vld [vmem:[#allocation2 + $0x140] sm:$0xff] }
  0x58   :  { %456 = vmatpush2.msra.mxu0 %v243_v54  ;;  %527 = vmatpush2.msra.mxu1 %v245_v55  ;;  %v83_v50 = vld [vmem:[#allocation2 + $0x130] sm:$0xff]  ;;  %v82_v52 = vld [vmem:[#allocation2 + $0x128] sm:$0xff]  ;;  %v84_v53 = vld [vmem:[#allocation2 + $0x138] sm:$0xff] }
  0x59   :  { %457 = vmatprep.subr.mxu0 %v233_v56  ;;  %528 = vmatprep.subr.mxu1 %v235_v57  ;;  %v72_v54 = vld [vmem:[#allocation2 + $0xd8] sm:$0xff]  ;;  %v74_v55 = vld [vmem:[#allocation2 + $0xe8] sm:$0xff]  ;;  %v71_v56 = vld [vmem:[#allocation2 + $0xd0] sm:$0xff] }
  0x5a   :  { %458 = vmatpush2.msra.mxu0 %v232_v58  ;;  %529 = vmatpush2.msra.mxu1 %v234_v59  ;;  %v73_v57 = vld [vmem:[#allocation2 + $0xe0] sm:$0xff]  ;;  %v63_v59 = vld [vmem:[#allocation2 + $0x90] sm:$0xff] }
  0x5b   :  { %459 = vmatprep.subr.mxu0 %v222_v60  ;;  %530 = vmatprep.subr.mxu1 %v224_v61  ;;  %v61_v58 = vld [vmem:[#allocation2 + $0x80] sm:$0xff]  ;;  %v60_v60 = vld [vmem:[#allocation2 + $0x78] sm:$0xff]  ;;  %v62_v61 = vld [vmem:[#allocation2 + $0x88] sm:$0xff] }
  0x5c   :  { %460 = vmatpush2.msra.mxu0 %v221_v62  ;;  %461 = vmatprep.mubr.f32.mxu0 %v2475_v63  ;;  %v50_v62 = vld [vmem:[#allocation2 + $0x28] sm:$0xff] }
  0x5d   :  { %531 = vmatpush2.msra.mxu1 %v223_v0  ;;  %532 = vmatprep.mubr.f32.mxu1 %v2475_v63  ;;  %v52_v0 = vld [vmem:[#allocation2 + $0x38] sm:$0xff] }
  0x5e   :  { %462 = vmatmul.mubr.f32.vlgmr.msra.gmra.mxu0 %v2480_v1  ;;  %533 = vmatmul.mubr.f32.vlgmr.msra.gmra.mxu1 %v2480_v1 }
  0x5f   :  { %539 = vmatprep.subr.mxu0 %v215_v2  ;;  %610 = vmatprep.subr.mxu1 %v217_v3  ;;  %v49_v2 = vld [vmem:[#allocation2 + $0x20] sm:$0xff]  ;;  %v51_v3 = vld [vmem:[#allocation2 + $0x30] sm:$0xff] }
  0x60   :  { %540 = vmatpush1.msra.mxu0 %v214_v4  ;;  %611 = vmatpush1.msra.mxu1 %v216_v5  ;;  %v391_v4 = vld [vmem:[#allocation2 + $0xad0] sm:$0xff]  ;;  %v393_v5 = vld [vmem:[#allocation2 + $0xae0] sm:$0xff] }
  0x61   :  { %541 = vmatprep.subr.mxu0 %v204_v6  ;;  %612 = vmatprep.subr.mxu1 %v206_v7  ;;  %v390_v6 = vld [vmem:[#allocation2 + $0xac8] sm:$0xff]  ;;  %v392_v7 = vld [vmem:[#allocation2 + $0xad8] sm:$0xff] }
  0x62   :  { %542 = vmatpush1.msra.mxu0 %v203_v8  ;;  %613 = vmatpush1.msra.mxu1 %v205_v9  ;;  %v380_v8 = vld [vmem:[#allocation2 + $0xa78] sm:$0xff]  ;;  %v382_v9 = vld [vmem:[#allocation2 + $0xa88] sm:$0xff] }
  0x63   :  { %543 = vmatprep.subr.mxu0 %v193_v10  ;;  %614 = vmatprep.subr.mxu1 %v195_v11  ;;  %v379_v10 = vld [vmem:[#allocation2 + $0xa70] sm:$0xff]  ;;  %v381_v11 = vld [vmem:[#allocation2 + $0xa80] sm:$0xff] }
  0x64   :  { %544 = vmatpush1.msra.mxu0 %v192_v12  ;;  %615 = vmatpush1.msra.mxu1 %v194_v13  ;;  %v369_v12 = vld [vmem:[#allocation2 + $0xa20] sm:$0xff]  ;;  %v371_v13 = vld [vmem:[#allocation2 + $0xa30] sm:$0xff] }
  0x65   :  { %545 = vmatprep.subr.mxu0 %v182_v14  ;;  %616 = vmatprep.subr.mxu1 %v184_v15  ;;  %v368_v14 = vld [vmem:[#allocation2 + $0xa18] sm:$0xff]  ;;  %v370_v15 = vld [vmem:[#allocation2 + $0xa28] sm:$0xff] }
  0x66   :  { %546 = vmatpush1.msra.mxu0 %v181_v16  ;;  %617 = vmatpush1.msra.mxu1 %v183_v17  ;;  %v358_v16 = vld [vmem:[#allocation2 + $0x9c8] sm:$0xff]  ;;  %v360_v17 = vld [vmem:[#allocation2 + $0x9d8] sm:$0xff] }
  0x67   :  { %547 = vmatprep.subr.mxu0 %v171_v18  ;;  %618 = vmatprep.subr.mxu1 %v173_v19  ;;  %v357_v18 = vld [vmem:[#allocation2 + $0x9c0] sm:$0xff]  ;;  %v359_v19 = vld [vmem:[#allocation2 + $0x9d0] sm:$0xff] }
  0x68   :  { %548 = vmatpush1.msra.mxu0 %v170_v20  ;;  %619 = vmatpush1.msra.mxu1 %v172_v21  ;;  %v347_v20 = vld [vmem:[#allocation2 + $0x970] sm:$0xff]  ;;  %v349_v21 = vld [vmem:[#allocation2 + $0x980] sm:$0xff] }
  0x69   :  { %549 = vmatprep.subr.mxu0 %v160_v22  ;;  %620 = vmatprep.subr.mxu1 %v162_v23  ;;  %v346_v22 = vld [vmem:[#allocation2 + $0x968] sm:$0xff]  ;;  %v348_v23 = vld [vmem:[#allocation2 + $0x978] sm:$0xff] }
  0x6a   :  { %550 = vmatpush1.msra.mxu0 %v159_v24  ;;  %621 = vmatpush1.msra.mxu1 %v161_v25  ;;  %v336_v24 = vld [vmem:[#allocation2 + $0x918] sm:$0xff]  ;;  %v338_v25 = vld [vmem:[#allocation2 + $0x928] sm:$0xff] }
  0x6b   :  { %551 = vmatprep.subr.mxu0 %v149_v26  ;;  %622 = vmatprep.subr.mxu1 %v151_v27  ;;  %v335_v26 = vld [vmem:[#allocation2 + $0x910] sm:$0xff]  ;;  %v337_v27 = vld [vmem:[#allocation2 + $0x920] sm:$0xff] }
  0x6c   :  { %552 = vmatpush1.msra.mxu0 %v148_v28  ;;  %623 = vmatpush1.msra.mxu1 %v150_v29  ;;  %v325_v28 = vld [vmem:[#allocation2 + $0x8c0] sm:$0xff]  ;;  %v327_v29 = vld [vmem:[#allocation2 + $0x8d0] sm:$0xff] }
  0x6d   :  { %553 = vmatprep.subr.mxu0 %v138_v30  ;;  %624 = vmatprep.subr.mxu1 %v140_v31  ;;  %v324_v30 = vld [vmem:[#allocation2 + $0x8b8] sm:$0xff]  ;;  %v326_v31 = vld [vmem:[#allocation2 + $0x8c8] sm:$0xff] }
  0x6e   :  { %554 = vmatpush1.msra.mxu0 %v137_v32  ;;  %625 = vmatpush1.msra.mxu1 %v139_v33  ;;  %v314_v32 = vld [vmem:[#allocation2 + $0x868] sm:$0xff]  ;;  %v316_v33 = vld [vmem:[#allocation2 + $0x878] sm:$0xff] }
  0x6f   :  { %555 = vmatprep.subr.mxu0 %v127_v34  ;;  %626 = vmatprep.subr.mxu1 %v129_v35  ;;  %v313_v34 = vld [vmem:[#allocation2 + $0x860] sm:$0xff]  ;;  %v315_v35 = vld [vmem:[#allocation2 + $0x870] sm:$0xff] }
  0x70   :  { %556 = vmatpush1.msra.mxu0 %v126_v36  ;;  %627 = vmatpush1.msra.mxu1 %v128_v37  ;;  %v303_v36 = vld [vmem:[#allocation2 + $0x810] sm:$0xff]  ;;  %v305_v37 = vld [vmem:[#allocation2 + $0x820] sm:$0xff] }
  0x71   :  { %557 = vmatprep.subr.mxu0 %v116_v38  ;;  %628 = vmatprep.subr.mxu1 %v118_v39  ;;  %v302_v38 = vld [vmem:[#allocation2 + $0x808] sm:$0xff]  ;;  %v304_v39 = vld [vmem:[#allocation2 + $0x818] sm:$0xff] }
  0x72   :  { %558 = vmatpush1.msra.mxu0 %v115_v40  ;;  %629 = vmatpush1.msra.mxu1 %v117_v41  ;;  %v292_v40 = vld [vmem:[#allocation2 + $0x7b8] sm:$0xff]  ;;  %v294_v41 = vld [vmem:[#allocation2 + $0x7c8] sm:$0xff] }
  0x73   :  { %559 = vmatprep.subr.mxu0 %v105_v42  ;;  %630 = vmatprep.subr.mxu1 %v107_v43  ;;  %v291_v42 = vld [vmem:[#allocation2 + $0x7b0] sm:$0xff]  ;;  %v293_v43 = vld [vmem:[#allocation2 + $0x7c0] sm:$0xff] }
  0x74   :  { %560 = vmatpush1.msra.mxu0 %v104_v44  ;;  %631 = vmatpush1.msra.mxu1 %v106_v45  ;;  %v281_v44 = vld [vmem:[#allocation2 + $0x760] sm:$0xff]  ;;  %v283_v45 = vld [vmem:[#allocation2 + $0x770] sm:$0xff] }
  0x75   :  { %561 = vmatprep.subr.mxu0 %v94_v46  ;;  %632 = vmatprep.subr.mxu1 %v96_v47  ;;  %v280_v46 = vld [vmem:[#allocation2 + $0x758] sm:$0xff]  ;;  %v282_v47 = vld [vmem:[#allocation2 + $0x768] sm:$0xff] }
  0x76   :  { %562 = vmatpush1.msra.mxu0 %v93_v48  ;;  %633 = vmatpush1.msra.mxu1 %v95_v49  ;;  %v270_v48 = vld [vmem:[#allocation2 + $0x708] sm:$0xff]  ;;  %v272_v49 = vld [vmem:[#allocation2 + $0x718] sm:$0xff] }
  0x77   :  { %563 = vmatprep.subr.mxu0 %v83_v50  ;;  %634 = vmatprep.subr.mxu1 %v85_v51  ;;  %v269_v50 = vld [vmem:[#allocation2 + $0x700] sm:$0xff]  ;;  %v271_v51 = vld [vmem:[#allocation2 + $0x710] sm:$0xff] }
  0x78   :  { %564 = vmatpush1.msra.mxu0 %v82_v52  ;;  %635 = vmatpush1.msra.mxu1 %v84_v53  ;;  %v259_v52 = vld [vmem:[#allocation2 + $0x6b0] sm:$0xff]  ;;  %v261_v53 = vld [vmem:[#allocation2 + $0x6c0] sm:$0xff] }
  0x79   :  { %565 = vmatprep.subr.mxu0 %v72_v54  ;;  %636 = vmatprep.subr.mxu1 %v74_v55  ;;  %v258_v54 = vld [vmem:[#allocation2 + $0x6a8] sm:$0xff]  ;;  %v260_v55 = vld [vmem:[#allocation2 + $0x6b8] sm:$0xff] }
  0x7a   :  { %566 = vmatpush1.msra.mxu0 %v71_v56  ;;  %637 = vmatpush1.msra.mxu1 %v73_v57  ;;  %v248_v56 = vld [vmem:[#allocation2 + $0x658] sm:$0xff]  ;;  %v250_v57 = vld [vmem:[#allocation2 + $0x668] sm:$0xff] }
  0x7b   :  { %567 = vmatprep.subr.mxu0 %v61_v58  ;;  %638 = vmatprep.subr.mxu1 %v63_v59  ;;  %v247_v58 = vld [vmem:[#allocation2 + $0x650] sm:$0xff]  ;;  %v249_v59 = vld [vmem:[#allocation2 + $0x660] sm:$0xff] }
  0x7c   :  { %568 = vmatpush1.msra.mxu0 %v60_v60  ;;  %639 = vmatpush1.msra.mxu1 %v62_v61  ;;  %v237_v60 = vld [vmem:[#allocation2 + $0x600] sm:$0xff]  ;;  %v239_v61 = vld [vmem:[#allocation2 + $0x610] sm:$0xff] }
  0x7d   :  { %569 = vmatprep.subr.mxu0 %v50_v62  ;;  %640 = vmatprep.subr.mxu1 %v52_v0  ;;  %v236_v62 = vld [vmem:[#allocation2 + $0x5f8] sm:$0xff]  ;;  %v238_v0 = vld [vmem:[#allocation2 + $0x608] sm:$0xff] }
  0x7e   :  { %570 = vmatpush1.msra.mxu0 %v49_v2  ;;  %641 = vmatpush1.msra.mxu1 %v51_v3  ;;  %v226_v2 = vld [vmem:[#allocation2 + $0x5a8] sm:$0xff]  ;;  %v228_v3 = vld [vmem:[#allocation2 + $0x5b8] sm:$0xff] }
  0x7f   :  { %571 = vmatprep.subr.mxu0 %v391_v4  ;;  %642 = vmatprep.subr.mxu1 %v393_v5  ;;  %v225_v4 = vld [vmem:[#allocation2 + $0x5a0] sm:$0xff]  ;;  %v227_v5 = vld [vmem:[#allocation2 + $0x5b0] sm:$0xff] }
  0x80   :  { %572 = vmatpush2.msra.mxu0 %v390_v6  ;;  %643 = vmatpush2.msra.mxu1 %v392_v7  ;;  %v219_v6 = vld [vmem:[#allocation2 + $0x570] sm:$0xff]  ;;  %v396_v7 = vld [vmem:[#allocation2 + $0xaf8] sm:$0xff] }
  0x81   :  { %573 = vmatprep.subr.mxu0 %v380_v8  ;;  %644 = vmatprep.subr.mxu1 %v382_v9  ;;  %v218_v8 = vld [vmem:[#allocation2 + $0x568] sm:$0xff]  ;;  %v220_v9 = vld [vmem:[#allocation2 + $0x578] sm:$0xff] }
  0x82   :  { %574 = vmatpush2.msra.mxu0 %v379_v10  ;;  %645 = vmatpush2.msra.mxu1 %v381_v11  ;;  %v208_v10 = vld [vmem:[#allocation2 + $0x518] sm:$0xff]  ;;  %v385_v11 = vld [vmem:[#allocation2 + $0xaa0] sm:$0xff] }
  0x83   :  { %575 = vmatprep.subr.mxu0 %v369_v12  ;;  %646 = vmatprep.subr.mxu1 %v371_v13  ;;  %v207_v12 = vld [vmem:[#allocation2 + $0x510] sm:$0xff]  ;;  %v209_v13 = vld [vmem:[#allocation2 + $0x520] sm:$0xff] }
  0x84   :  { %576 = vmatpush2.msra.mxu0 %v368_v14  ;;  %647 = vmatpush2.msra.mxu1 %v370_v15  ;;  %v197_v14 = vld [vmem:[#allocation2 + $0x4c0] sm:$0xff]  ;;  %v374_v15 = vld [vmem:[#allocation2 + $0xa48] sm:$0xff] }
  0x85   :  { %577 = vmatprep.subr.mxu0 %v358_v16  ;;  %648 = vmatprep.subr.mxu1 %v360_v17  ;;  %v196_v16 = vld [vmem:[#allocation2 + $0x4b8] sm:$0xff]  ;;  %v198_v17 = vld [vmem:[#allocation2 + $0x4c8] sm:$0xff] }
  0x86   :  { %578 = vmatpush2.msra.mxu0 %v357_v18  ;;  %649 = vmatpush2.msra.mxu1 %v359_v19  ;;  %v186_v18 = vld [vmem:[#allocation2 + $0x468] sm:$0xff]  ;;  %v363_v19 = vld [vmem:[#allocation2 + $0x9f0] sm:$0xff] }
  0x87   :  { %579 = vmatprep.subr.mxu0 %v347_v20  ;;  %650 = vmatprep.subr.mxu1 %v349_v21  ;;  %v185_v20 = vld [vmem:[#allocation2 + $0x460] sm:$0xff]  ;;  %v187_v21 = vld [vmem:[#allocation2 + $0x470] sm:$0xff] }
  0x88   :  { %580 = vmatpush2.msra.mxu0 %v346_v22  ;;  %651 = vmatpush2.msra.mxu1 %v348_v23  ;;  %v175_v22 = vld [vmem:[#allocation2 + $0x410] sm:$0xff]  ;;  %v352_v23 = vld [vmem:[#allocation2 + $0x998] sm:$0xff] }
  0x89   :  { %581 = vmatprep.subr.mxu0 %v336_v24  ;;  %652 = vmatprep.subr.mxu1 %v338_v25  ;;  %v174_v24 = vld [vmem:[#allocation2 + $0x408] sm:$0xff]  ;;  %v176_v25 = vld [vmem:[#allocation2 + $0x418] sm:$0xff] }
  0x8a   :  { %582 = vmatpush2.msra.mxu0 %v335_v26  ;;  %653 = vmatpush2.msra.mxu1 %v337_v27  ;;  %v164_v26 = vld [vmem:[#allocation2 + $0x3b8] sm:$0xff]  ;;  %v341_v27 = vld [vmem:[#allocation2 + $0x940] sm:$0xff] }
  0x8b   :  { %583 = vmatprep.subr.mxu0 %v325_v28  ;;  %654 = vmatprep.subr.mxu1 %v327_v29  ;;  %v163_v28 = vld [vmem:[#allocation2 + $0x3b0] sm:$0xff]  ;;  %v165_v29 = vld [vmem:[#allocation2 + $0x3c0] sm:$0xff] }
  0x8c   :  { %584 = vmatpush2.msra.mxu0 %v324_v30  ;;  %655 = vmatpush2.msra.mxu1 %v326_v31  ;;  %v153_v30 = vld [vmem:[#allocation2 + $0x360] sm:$0xff]  ;;  %v330_v31 = vld [vmem:[#allocation2 + $0x8e8] sm:$0xff] }
  0x8d   :  { %585 = vmatprep.subr.mxu0 %v314_v32  ;;  %656 = vmatprep.subr.mxu1 %v316_v33  ;;  %v152_v32 = vld [vmem:[#allocation2 + $0x358] sm:$0xff]  ;;  %v154_v33 = vld [vmem:[#allocation2 + $0x368] sm:$0xff] }
  0x8e   :  { %586 = vmatpush2.msra.mxu0 %v313_v34  ;;  %657 = vmatpush2.msra.mxu1 %v315_v35  ;;  %v142_v34 = vld [vmem:[#allocation2 + $0x308] sm:$0xff]  ;;  %v319_v35 = vld [vmem:[#allocation2 + $0x890] sm:$0xff] }
  0x8f   :  { %587 = vmatprep.subr.mxu0 %v303_v36  ;;  %658 = vmatprep.subr.mxu1 %v305_v37  ;;  %v141_v36 = vld [vmem:[#allocation2 + $0x300] sm:$0xff]  ;;  %v143_v37 = vld [vmem:[#allocation2 + $0x310] sm:$0xff] }
  0x90   :  { %588 = vmatpush2.msra.mxu0 %v302_v38  ;;  %659 = vmatpush2.msra.mxu1 %v304_v39  ;;  %v131_v38 = vld [vmem:[#allocation2 + $0x2b0] sm:$0xff]  ;;  %v308_v39 = vld [vmem:[#allocation2 + $0x838] sm:$0xff] }
  0x91   :  { %589 = vmatprep.subr.mxu0 %v292_v40  ;;  %660 = vmatprep.subr.mxu1 %v294_v41  ;;  %v130_v40 = vld [vmem:[#allocation2 + $0x2a8] sm:$0xff]  ;;  %v132_v41 = vld [vmem:[#allocation2 + $0x2b8] sm:$0xff] }
  0x92   :  { %590 = vmatpush2.msra.mxu0 %v291_v42  ;;  %661 = vmatpush2.msra.mxu1 %v293_v43  ;;  %v120_v42 = vld [vmem:[#allocation2 + $0x258] sm:$0xff]  ;;  %v297_v43 = vld [vmem:[#allocation2 + $0x7e0] sm:$0xff] }
  0x93   :  { %591 = vmatprep.subr.mxu0 %v281_v44  ;;  %662 = vmatprep.subr.mxu1 %v283_v45  ;;  %v119_v44 = vld [vmem:[#allocation2 + $0x250] sm:$0xff]  ;;  %v121_v45 = vld [vmem:[#allocation2 + $0x260] sm:$0xff] }
  0x94   :  { %592 = vmatpush2.msra.mxu0 %v280_v46  ;;  %663 = vmatpush2.msra.mxu1 %v282_v47  ;;  %v109_v46 = vld [vmem:[#allocation2 + $0x200] sm:$0xff]  ;;  %v286_v47 = vld [vmem:[#allocation2 + $0x788] sm:$0xff] }
  0x95   :  { %593 = vmatprep.subr.mxu0 %v270_v48  ;;  %664 = vmatprep.subr.mxu1 %v272_v49  ;;  %v108_v48 = vld [vmem:[#allocation2 + $0x1f8] sm:$0xff]  ;;  %v110_v49 = vld [vmem:[#allocation2 + $0x208] sm:$0xff] }
  0x96   :  { %594 = vmatpush2.msra.mxu0 %v269_v50  ;;  %665 = vmatpush2.msra.mxu1 %v271_v51  ;;  %v98_v50 = vld [vmem:[#allocation2 + $0x1a8] sm:$0xff]  ;;  %v275_v51 = vld [vmem:[#allocation2 + $0x730] sm:$0xff] }
  0x97   :  { %595 = vmatprep.subr.mxu0 %v259_v52  ;;  %666 = vmatprep.subr.mxu1 %v261_v53  ;;  %v97_v52 = vld [vmem:[#allocation2 + $0x1a0] sm:$0xff]  ;;  %v99_v53 = vld [vmem:[#allocation2 + $0x1b0] sm:$0xff] }
  0x98   :  { %596 = vmatpush2.msra.mxu0 %v258_v54  ;;  %667 = vmatpush2.msra.mxu1 %v260_v55  ;;  %v87_v54 = vld [vmem:[#allocation2 + $0x150] sm:$0xff]  ;;  %v264_v55 = vld [vmem:[#allocation2 + $0x6d8] sm:$0xff] }
  0x99   :  { %597 = vmatprep.subr.mxu0 %v248_v56  ;;  %668 = vmatprep.subr.mxu1 %v250_v57  ;;  %v86_v56 = vld [vmem:[#allocation2 + $0x148] sm:$0xff]  ;;  %v88_v57 = vld [vmem:[#allocation2 + $0x158] sm:$0xff] }
  0x9a   :  { %598 = vmatpush2.msra.mxu0 %v247_v58  ;;  %669 = vmatpush2.msra.mxu1 %v249_v59  ;;  %v76_v58 = vld [vmem:[#allocation2 + $0xf8] sm:$0xff]  ;;  %v253_v59 = vld [vmem:[#allocation2 + $0x680] sm:$0xff] }
  0x9b   :  { %599 = vmatprep.subr.mxu0 %v237_v60  ;;  %670 = vmatprep.subr.mxu1 %v239_v61  ;;  %v75_v60 = vld [vmem:[#allocation2 + $0xf0] sm:$0xff]  ;;  %v77_v61 = vld [vmem:[#allocation2 + $0x100] sm:$0xff] }
  0x9c   :  { %600 = vmatpush2.msra.mxu0 %v236_v62  ;;  %671 = vmatpush2.msra.mxu1 %v238_v0  ;;  %v65_v62 = vld [vmem:[#allocation2 + $0xa0] sm:$0xff]  ;;  %v242_v0 = vld [vmem:[#allocation2 + $0x628] sm:$0xff] }
  0x9d   :  { %601 = vmatprep.subr.mxu0 %v226_v2  ;;  %672 = vmatprep.subr.mxu1 %v228_v3  ;;  %v64_v2 = vld [vmem:[#allocation2 + $0x98] sm:$0xff]  ;;  %v66_v3 = vld [vmem:[#allocation2 + $0xa8] sm:$0xff] }
  0x9e   :  { %602 = vmatpush2.msra.mxu0 %v225_v4  ;;  %603 = vmatprep.mubr.f32.mxu0 %v2475_v63  ;;  %v54_v4 = vld [vmem:[#allocation2 + $0x48] sm:$0xff] }
  0x9f   :  { %673 = vmatpush2.msra.mxu1 %v227_v5  ;;  %674 = vmatprep.mubr.f32.mxu1 %v2475_v63  ;;  %v231_v5 = vld [vmem:[#allocation2 + $0x5d0] sm:$0xff] }
  0xa0   :  { %604 = vmatmul.mubr.f32.vlgmr.msra.gmra.mxu0 %v2480_v1  ;;  %675 = vmatmul.mubr.f32.vlgmr.msra.gmra.mxu1 %v2480_v1 }
  0xa1   :  { %681 = vmatprep.subr.mxu0 %v219_v6  ;;  %2285 = vmatprep.subr.mxu1 %v396_v7  ;;  %v53_v6 = vld [vmem:[#allocation2 + $0x40] sm:$0xff]  ;;  %v55_v7 = vld [vmem:[#allocation2 + $0x50] sm:$0xff] }
  0xa2   :  { %682 = vmatpush1.msra.mxu0 %v218_v8  ;;  %2286 = vmatpush3.msra.mxu1 %v220_v9  ;;  %v395_v8 = vld [vmem:[#allocation2 + $0xaf0] sm:$0xff]  ;;  %v394_v9 = vld [vmem:[#allocation2 + $0xae8] sm:$0xff] }
  0xa3   :  { %683 = vmatprep.subr.mxu0 %v208_v10  ;;  %2287 = vmatprep.subr.mxu1 %v385_v11  ;;  %v384_v10 = vld [vmem:[#allocation2 + $0xa98] sm:$0xff]  ;;  %v383_v11 = vld [vmem:[#allocation2 + $0xa90] sm:$0xff] }
  0xa4   :  { %684 = vmatpush1.msra.mxu0 %v207_v12  ;;  %2288 = vmatpush3.msra.mxu1 %v209_v13  ;;  %v373_v12 = vld [vmem:[#allocation2 + $0xa40] sm:$0xff]  ;;  %v372_v13 = vld [vmem:[#allocation2 + $0xa38] sm:$0xff] }
  0xa5   :  { %685 = vmatprep.subr.mxu0 %v197_v14  ;;  %2289 = vmatprep.subr.mxu1 %v374_v15  ;;  %v362_v14 = vld [vmem:[#allocation2 + $0x9e8] sm:$0xff]  ;;  %v361_v15 = vld [vmem:[#allocation2 + $0x9e0] sm:$0xff] }
  0xa6   :  { %686 = vmatpush1.msra.mxu0 %v196_v16  ;;  %2290 = vmatpush3.msra.mxu1 %v198_v17  ;;  %v351_v16 = vld [vmem:[#allocation2 + $0x990] sm:$0xff]  ;;  %v350_v17 = vld [vmem:[#allocation2 + $0x988] sm:$0xff] }
  0xa7   :  { %687 = vmatprep.subr.mxu0 %v186_v18  ;;  %2291 = vmatprep.subr.mxu1 %v363_v19  ;;  %v340_v18 = vld [vmem:[#allocation2 + $0x938] sm:$0xff]  ;;  %v339_v19 = vld [vmem:[#allocation2 + $0x930] sm:$0xff] }
  0xa8   :  { %688 = vmatpush1.msra.mxu0 %v185_v20  ;;  %2292 = vmatpush3.msra.mxu1 %v187_v21  ;;  %v329_v20 = vld [vmem:[#allocation2 + $0x8e0] sm:$0xff]  ;;  %v328_v21 = vld [vmem:[#allocation2 + $0x8d8] sm:$0xff] }
  0xa9   :  { %689 = vmatprep.subr.mxu0 %v175_v22  ;;  %2293 = vmatprep.subr.mxu1 %v352_v23  ;;  %v318_v22 = vld [vmem:[#allocation2 + $0x888] sm:$0xff]  ;;  %v307_v23 = vld [vmem:[#allocation2 + $0x830] sm:$0xff] }
  0xaa   :  { %690 = vmatpush1.msra.mxu0 %v174_v24  ;;  %2294 = vmatpush3.msra.mxu1 %v176_v25  ;;  %v306_v24 = vld [vmem:[#allocation2 + $0x828] sm:$0xff]  ;;  %v296_v25 = vld [vmem:[#allocation2 + $0x7d8] sm:$0xff] }
  0xab   :  { %691 = vmatprep.subr.mxu0 %v164_v26  ;;  %2295 = vmatprep.subr.mxu1 %v341_v27  ;;  %v295_v26 = vld [vmem:[#allocation2 + $0x7d0] sm:$0xff]  ;;  %v285_v27 = vld [vmem:[#allocation2 + $0x780] sm:$0xff] }
  0xac   :  { %692 = vmatpush1.msra.mxu0 %v163_v28  ;;  %2296 = vmatpush3.msra.mxu1 %v165_v29  ;;  %v284_v28 = vld [vmem:[#allocation2 + $0x778] sm:$0xff]  ;;  %v274_v29 = vld [vmem:[#allocation2 + $0x728] sm:$0xff] }
  0xad   :  { %693 = vmatprep.subr.mxu0 %v153_v30  ;;  %2297 = vmatprep.subr.mxu1 %v330_v31  ;;  %v273_v30 = vld [vmem:[#allocation2 + $0x720] sm:$0xff]  ;;  %v263_v31 = vld [vmem:[#allocation2 + $0x6d0] sm:$0xff] }
  0xae   :  { %694 = vmatpush1.msra.mxu0 %v152_v32  ;;  %2298 = vmatpush3.msra.mxu1 %v154_v33  ;;  %v262_v32 = vld [vmem:[#allocation2 + $0x6c8] sm:$0xff]  ;;  %v252_v33 = vld [vmem:[#allocation2 + $0x678] sm:$0xff] }
  0xaf   :  { %695 = vmatprep.subr.mxu0 %v142_v34  ;;  %2299 = vmatprep.subr.mxu1 %v319_v35  ;;  %v251_v34 = vld [vmem:[#allocation2 + $0x670] sm:$0xff]  ;;  %v241_v35 = vld [vmem:[#allocation2 + $0x620] sm:$0xff] }
  0xb0   :  { %696 = vmatpush1.msra.mxu0 %v141_v36  ;;  %2300 = vmatpush3.msra.mxu1 %v143_v37  ;;  %v240_v36 = vld [vmem:[#allocation2 + $0x618] sm:$0xff]  ;;  %v230_v37 = vld [vmem:[#allocation2 + $0x5c8] sm:$0xff] }
  0xb1   :  { %697 = vmatprep.subr.mxu0 %v131_v38  ;;  %2301 = vmatprep.subr.mxu1 %v308_v39  ;;  %v229_v38 = vld [vmem:[#allocation2 + $0x5c0] sm:$0xff]  ;;  %v855_v39 = vlaneseq }
  0xb2   :  { %698 = vmatpush1.msra.mxu0 %v130_v40  ;;  %2302 = vmatpush3.msra.mxu1 %v132_v41  ;;  %v2494_v41 = vld [vmem:[#allocation5 + $0x1b8] sm:$0xf] }
  0xb3   :  { %699 = vmatprep.subr.mxu0 %v120_v42  ;;  %2303 = vmatprep.subr.mxu1 %v297_v43  ;;  %v856_v40 = vshrl.u32 %v855_v39, 7 }
  0xb4   :  { %700 = vmatpush1.msra.mxu0 %v119_v44  ;;  %2304 = vmatpush3.msra.mxu1 %v121_v45 }
  0xb5   :  { %701 = vmatprep.subr.mxu0 %v109_v46  ;;  %2305 = vmatprep.subr.mxu1 %v286_v47  ;;  %v2496_v42 = vsub.s32 0, %v856_v40  ;;  %v2498_v43 = vsub.s32 1, %v856_v40  ;;  %v2500_v44 = vsub.s32 2, %v856_v40  ;;  %v2502_v45 = vsub.s32 3, %v856_v40 }
  0xb6   :  { %702 = vmatpush1.msra.mxu0 %v108_v48  ;;  %2306 = vmatpush3.msra.mxu1 %v110_v49  ;;  %v2504_v46 = vsub.s32 4, %v856_v40  ;;  %v2506_v47 = vsub.s32 5, %v856_v40  ;;  %v2508_v48 = vsub.s32 6, %v856_v40  ;;  %v2510_v49 = vsub.s32 7, %v856_v40 }
  0xb7   :  { %703 = vmatprep.subr.mxu0 %v98_v50  ;;  %2307 = vmatprep.subr.mxu1 %v275_v51  ;;  %v844_v50 = vld [vmem:[#allocation5] sm:$0xff]  ;;  %v921_v51 = vld [vmem:[#allocation5 + $0x58] sm:$0xff] }
  0xb8   :  { %704 = vmatpush1.msra.mxu0 %v97_v52  ;;  %2308 = vmatpush3.msra.mxu1 %v99_v53  ;;  %v1163_v52 = vrot.slane %v2494_v41, 6  ;;  %v2513_v53 = vld [vmem:[#allocation5 + $0x1c0] sm:$0xf] }
  0xb9   :  { %705 = vmatprep.subr.mxu0 %v87_v54  ;;  %2309 = vmatprep.subr.mxu1 %v264_v55 }
  0xba   :  { %706 = vmatpush1.msra.mxu0 %v86_v56  ;;  %2310 = vmatpush3.msra.mxu1 %v88_v57  ;;  %v998_v56 = vld [vmem:[#allocation5 + $0xb0] sm:$0xff] }
  0xbb   :  { %707 = vmatprep.subr.mxu0 %v76_v58  ;;  %2311 = vmatprep.subr.mxu1 %v253_v59  ;;  %v1075_v58 = vld [vmem:[#allocation5 + $0x108] sm:$0xff] }
  0xbc   :  { %708 = vmatpush1.msra.mxu0 %v75_v60  ;;  %2312 = vmatpush3.msra.mxu1 %v77_v61  ;;  %v822_v60 = vld [vmem:[#allocation5 + $0x160] sm:$0xff]  ;;  %v2520_v61 = vrot.slane %v2494_v41, 4 }
  0xbd   :  { %709 = vmatprep.subr.mxu0 %v65_v62  ;;  %2313 = vmatprep.subr.mxu1 %v242_v0 }
  0xbe   :  { %710 = vmatpush1.msra.mxu0 %v64_v2  ;;  %2314 = vmatpush3.msra.mxu1 %v66_v3 }
  0xbf   :  { %711 = vmatprep.subr.mxu0 %v54_v4  ;;  %2315 = vmatprep.subr.mxu1 %v231_v5 }
  0xc0   :  { %712 = vmatpush1.msra.mxu0 %v53_v6  ;;  %2316 = vmatpush3.msra.mxu1 %v55_v7  ;;  %v1164_v7 = vrot.slane %v2513_v53, 6 }
  0xc1   :  { %816 = vmatprep.mubr.f32.mxu1 %v2475_v63  ;;  %713 = vmatprep.subr.mxu0 %v395_v8 }
  0xc2   :  { %817 = vmatmul.mubr.f32.vlgmr.msra.gmra.mxu1 %v2480_v1  ;;  %714 = vmatpush2.msra.mxu0 %v394_v9 }
  0xc3   :  { %715 = vmatprep.subr.mxu0 %v384_v10  ;;  %745 = vmatprep.mubr.f32.mxu0 %v2475_v63  ;;  %v317_v63 = vld [vmem:[#allocation2 + $0x880] sm:$0xff] }
  0xc4   :  { %716 = vmatpush2.msra.mxu0 %v383_v11 }
  0xc5   :  { %717 = vmatprep.subr.mxu0 %v373_v12  ;;  %v846_v12 = vld [vmem:[#allocation5 + $0x10] sm:$0xff] }
  0xc6   :  { %718 = vmatpush2.msra.mxu0 %v372_v13  ;;  %v923_v13 = vld [vmem:[#allocation5 + $0x68] sm:$0xff] }
  0xc7   :  { %719 = vmatprep.subr.mxu0 %v362_v14 }
  0xc8   :  { %720 = vmatpush2.msra.mxu0 %v361_v15 }
  0xc9   :  { %721 = vmatprep.subr.mxu0 %v351_v16 }
  0xca   :  { %722 = vmatpush2.msra.mxu0 %v350_v17  ;;  %v1000_v17 = vld [vmem:[#allocation5 + $0xc0] sm:$0xff] }
  0xcb   :  { %723 = vmatprep.subr.mxu0 %v340_v18 }
  0xcc   :  { %724 = vmatpush2.msra.mxu0 %v339_v19 }
  0xcd   :  { %725 = vmatprep.subr.mxu0 %v329_v20 }
  0xce   :  { %726 = vmatpush2.msra.mxu0 %v328_v21  ;;  %v824_v21 = vld [vmem:[#allocation5 + $0x170] sm:$0xff] }
  0xcf   :  { %727 = vmatprep.subr.mxu0 %v318_v22 }
  0xd0   :  { %728 = vmatpush2.msra.mxu0 %v317_v63 }
  0xd1   :  { %729 = vmatprep.subr.mxu0 %v307_v23 }
  0xd2   :  { %730 = vmatpush2.msra.mxu0 %v306_v24  ;;  %v835_v24 = vld [vmem:[#allocation5 + $0x1c8] sm:$0xf] }
  0xd3   :  { %731 = vmatprep.subr.mxu0 %v296_v25  ;;  %v1165_v40 = vrot.slane %v835_v24, 6 }
  0xd4   :  { %732 = vmatpush2.msra.mxu0 %v295_v26 }
  0xd5   :  { %733 = vmatprep.subr.mxu0 %v285_v27 }
  0xd6   :  { %734 = vmatpush2.msra.mxu0 %v284_v28 }
  0xd7   :  { %735 = vmatprep.subr.mxu0 %v274_v29 }
  0xd8   :  { %736 = vmatpush2.msra.mxu0 %v273_v30  ;;  %v1077_v30 = vld [vmem:[#allocation5 + $0x118] sm:$0xff] }
  0xd9   :  { %737 = vmatprep.subr.mxu0 %v263_v31 }
  0xda   :  { %738 = vmatpush2.msra.mxu0 %v262_v32 }
  0xdb   :  { %739 = vmatprep.subr.mxu0 %v252_v33 }
  0xdc   :  { %740 = vmatpush2.msra.mxu0 %v251_v34 }
  0xdd   :  { %741 = vmatprep.subr.mxu0 %v241_v35 }
  0xde   :  { %742 = vmatpush2.msra.mxu0 %v240_v36 }
  0xdf   :  { %743 = vmatprep.subr.mxu0 %v230_v37 }
  0xe0   :  { %744 = vmatpush2.msra.mxu0 %v229_v38 }
  0xe1   :  { %746 = vmatmul.mubr.f32.vlgmr.msra.gmra.mxu0 %v2480_v1 }
 0x11e   :  { %v463_v1 = vpop.f32.mrf.mxu0  ;;  %v534_v3 = vpop.f32.mrf.mxu1 }
 0x11f   :  { %v858_v54 = vrot.slane %v463_v1, %v2496_v42  ;;  %v935_v55 = vrot.slane %v463_v1, %v2498_v43  ;;  %v1012_v57 = vrot.slane %v463_v1, %v2500_v44  ;;  %v1089_v59 = vrot.slane %v463_v1, %v2502_v45 }
 0x120   :  { %v1598_v62 = vrot.slane %v463_v1, %v2504_v46  ;;  %v1675_v0 = vrot.slane %v463_v1, %v2506_v47  ;;  %v1752_v2 = vrot.slane %v463_v1, %v2508_v48  ;;  %v1829_v6 = vrot.slane %v463_v1, %v2510_v49  ;;  %v2535_v37 = vpop.f32.mrf.mxu0 }
 0x121   :  { %v899_v4 = vmul.f32 %v858_v54, %v844_v50  ;;  %v976_v5 = vmul.f32 %v935_v55, %v921_v51  ;;  %v1053_v8 = vmul.f32 %v1012_v57, %v998_v56  ;;  %v1130_v9 = vmul.f32 %v1089_v59, %v1075_v58 }
 0x122   :  { %v1639_v10 = vmul.f32 %v1598_v62, %v844_v50  ;;  %v1716_v11 = vmul.f32 %v1675_v0, %v921_v51  ;;  %v866_v15 = vrot.slane %v534_v3, %v2496_v42  ;;  %v943_v16 = vrot.slane %v534_v3, %v2498_v43 }
 0x123   :  { %v910_v14 = vadd.f32 %v899_v4, %v822_v60  ;;  %v1020_v18 = vrot.slane %v534_v3, %v2500_v44  ;;  %v1793_v20 = vmul.f32 %v1752_v2, %v998_v56  ;;  %v1606_v22 = vrot.slane %v534_v3, %v2504_v46 }
 0x124   :  { %v1650_v19 = vadd.f32 %v1639_v10, %v822_v60  ;;  %v1683_v63 = vrot.slane %v534_v3, %v2506_v47  ;;  %v901_v25 = vmul.f32 %v866_v15, %v846_v12  ;;  %v978_v26 = vmul.f32 %v943_v16, %v923_v13 }
 0x125   :  { %v987_v23 = vadd.f32 %v976_v5, %v910_v14  ;;  %v1097_v27 = vrot.slane %v534_v3, %v2502_v45  ;;  %v1055_v29 = vmul.f32 %v1020_v18, %v1000_v17  ;;  %v1641_v31 = vmul.f32 %v1606_v22, %v846_v12 }
 0x126   :  { %v1727_v28 = vadd.f32 %v1716_v11, %v1650_v19  ;;  %v1718_v32 = vmul.f32 %v1683_v63, %v923_v13  ;;  %v912_v34 = vadd.f32 %v901_v25, %v824_v21  ;;  %v1760_v35 = vrot.slane %v534_v3, %v2508_v48 }
 0x127   :  { %v1064_v33 = vadd.f32 %v1053_v8, %v987_v23  ;;  %v1837_v36 = vrot.slane %v534_v3, %v2510_v49  ;;  %v1870_v39 = vmul.f32 %v1829_v6, %v1075_v58  ;;  %v1652_v1 = vadd.f32 %v1641_v31, %v824_v21  ;;  %v845_v6 = vld [vmem:[#allocation5 + $0x8] sm:$0xff] }
 0x128   :  { %v1804_v38 = vadd.f32 %v1793_v20, %v1727_v28  ;;  %v989_v51 = vadd.f32 %v978_v26, %v912_v34  ;;  %v1132_v54 = vmul.f32 %v1097_v27, %v1077_v30  ;;  %v1795_v55 = vmul.f32 %v1760_v35, %v1000_v17  ;;  %v922_v17 = vld [vmem:[#allocation5 + $0x60] sm:$0xff]  ;;  %v823_v21 = vld [vmem:[#allocation5 + $0x168] sm:$0xff]  ;;  %v2573_v27 = vld [vmem:[#allocation5 + $0x1d0] sm:$0xf] }
 0x129   :  { %v2537_v50 = vadd.f32 %v1130_v9, %v1064_v33  ;;  %v1729_v57 = vadd.f32 %v1718_v32, %v1652_v1  ;;  %v1872_v59 = vmul.f32 %v1837_v36, %v1077_v30  ;;  %v862_v60 = vrot.slane %v2535_v37, %v2496_v42  ;;  %v999_v34 = vld [vmem:[#allocation5 + $0xb8] sm:$0xff] }
 0x12a   :  { %v2539_v56 = vadd.f32 %v1870_v39, %v1804_v38  ;;  %v1066_v2 = vadd.f32 %v1055_v29, %v989_v51  ;;  %v939_v8 = vrot.slane %v2535_v37, %v2498_v43  ;;  %v2569_v22 = vrot.slane %v2513_v53, 4  ;;  %v1076_v38 = vld [vmem:[#allocation5 + $0x110] sm:$0xff] }
 0x12b   :  { %v1185_v62 = vmul.f32 %v1163_v52, %v2537_v50  ;;  %v1240_v58 = vmul.f32 0.2, %v2537_v50  ;;  %v1429_v0 = vrot.slane %v2537_v50, 4  ;;  %v1806_v5 = vadd.f32 %v1795_v55, %v1729_v57  ;;  %v2594_v57 = vpop.f32.mrf.mxu1 }
 0x12c   :  { %v1925_v3 = vmul.f32 0.2, %v2539_v56  ;;  %v2113_v4 = vrot.slane %v2539_v56, 4  ;;  %v1892_v11 = vmul.f32 %v2539_v56, %v1163_v52  ;;  %v2557_v12 = vadd.f32 %v1132_v54, %v1066_v2 }
 0x12d   :  { %v1251_v9 = vmul.f32 1.442695, %v1240_v58  ;;  %v1451_v10 = vsel %vm1383_vm0, %v1429_v0, %v2520_v61  ;;  %v1196_v13 = vmul.f32 0.1, %v1185_v62  ;;  %v2561_v16 = vadd.f32 %v1872_v59, %v1806_v5 }
 0x12e   :  { %1462 = vst [vmem:[#allocation7 + $0x58] sm:$0xff] %v1451_v10  ;;  %v1936_v14 = vmul.f32 1.442695, %v1925_v3  ;;  %v2135_v15 = vsel %vm1383_vm0, %v2113_v4, %v2520_v61  ;;  %v1187_v18 = vmul.f32 %v1165_v40, %v2557_v12  ;;  %v1242_v19 = vmul.f32 0.2, %v2557_v12  ;;  %v847_v4 = vld [vmem:[#allocation5 + $0x18] sm:$0xff] }
 0x12f   :  { %2325 = vpow2.f32 %v1251_v9  ;;  %2146 = vst [vmem:[#allocation7 + $0x160] sm:$0xff] %v2135_v15  ;;  %v900_v41 = vmul.f32 %v862_v60, %v845_v6  ;;  %v2565_v52 = vrot.slane %v835_v24, 4  ;;  %v1431_v20 = vrot.slane %v2557_v12, 4 }
 0x130   :  { %2327 = vpow2.f32 %v1936_v14  ;;  %v1255_v63 = vmul.f32 1.442695, %v1242_v19  ;;  %v1894_v23 = vmul.f32 %v2561_v16, %v1165_v40  ;;  %v2115_v25 = vrot.slane %v2561_v16, 4 }
 0x131   :  { %v977_v26 = vmul.f32 %v939_v8, %v922_v17  ;;  %v2576_v28 = vadd.f32 %v2520_v61, %v1196_v13  ;;  %v1903_v29 = vmul.f32 0.1, %v1892_v11  ;;  %v1453_v24 = vsel %vm1383_vm0, %v1431_v20, %v2565_v52  ;;  %v2622_v20 = vld [vmem:[#allocation5 + $0xc8] sm:$0xff] }
 0x132   :  { %v1927_v30 = vmul.f32 0.2, %v2561_v16  ;;  %v1198_v31 = vmul.f32 0.1, %v1187_v18  ;;  %2329 = vpow2.f32 %v1255_v63  ;;  %1464 = vst [vmem:[#allocation7 + $0x68] sm:$0xff] %v1453_v24  ;;  %v2137_v32 = vsel %vm1383_vm0, %v2115_v25, %v2565_v52 }
 0x133   :  { %v911_v33 = vadd.f32 %v900_v41, %v823_v21  ;;  %2148 = vst [vmem:[#allocation7 + $0x170] sm:$0xff] %v2137_v32  ;;  %v1016_v36 = vrot.slane %v2535_v37, %v2500_v44  ;;  %v1093_v39 = vrot.slane %v2535_v37, %v2502_v45  ;;  %v2588_v40 = vrot.slane %v2573_v27, 4  ;;  %v2632_v32 = vld [vmem:[#allocation5 + $0x120] sm:$0xff] }
 0x134   :  { %v1940_v35 = vmul.f32 1.442695, %v1927_v30  ;;  %v1905_v1 = vmul.f32 0.1, %v1894_v23  ;;  %v1602_v54 = vrot.slane %v2535_v37, %v2504_v46  ;;  %v1679_v55 = vrot.slane %v2535_v37, %v2506_v47 }
 0x135   :  { %v988_v51 = vadd.f32 %v977_v26, %v911_v33  ;;  %v1484_v59 = vrot.slane %v2576_v28, 4  ;;  %v2598_v60 = vadd.f32 %v1903_v29, %v2520_v61  ;;  %v1054_v62 = vmul.f32 %v1016_v36, %v999_v34 }
 0x136   :  { %2331 = vpow2.f32 %v1940_v35  ;;  %v2601_v58 = vadd.f32 %v2565_v52, %v1198_v31  ;;  %v1131_v0 = vmul.f32 %v1093_v39, %v1076_v38  ;;  %v1640_v2 = vmul.f32 %v1602_v54, %v845_v6  ;;  %v2614_v6 = vld [vmem:[#allocation5 + $0x70] sm:$0xff] }
 0x137   :  { %v1756_v3 = vrot.slane %v2535_v37, %v2508_v48  ;;  %v1065_v5 = vadd.f32 %v1054_v62, %v988_v51  ;;  %v1833_v8 = vrot.slane %v2535_v37, %v2510_v49  ;;  %v870_v9 = vrot.slane %v2594_v57, %v2496_v42 }
 0x138   :  { %v947_v10 = vrot.slane %v2594_v57, %v2498_v43  ;;  %v2612_v11 = vadd.f32 %v1905_v1, %v2565_v52  ;;  %v1651_v13 = vadd.f32 %v1640_v2, %v823_v21  ;;  %v1717_v14 = vmul.f32 %v1679_v55, %v922_v17  ;;  %v2625_v21 = vld [vmem:[#allocation5 + $0x178] sm:$0xff] }
 0x139   :  { %v1024_v15 = vrot.slane %v2594_v57, %v2500_v44  ;;  %v2168_v18 = vrot.slane %v2598_v60, 4  ;;  %v1486_v37 = vrot.slane %v2601_v58, 4  ;;  %v2620_v19 = vadd.f32 %v1131_v0, %v1065_v5 }
 0x13a   :  { %v902_v41 = vmul.f32 %v870_v9, %v847_v4  ;;  %v2170_v63 = vrot.slane %v2612_v11, 4  ;;  %v1728_v23 = vadd.f32 %v1717_v14, %v1651_v13  ;;  %v1794_v25 = vmul.f32 %v1756_v3, %v999_v34 }
 0x13b   :  { %v1101_v17 = vrot.slane %v2594_v57, %v2502_v45  ;;  %v1241_v29 = vmul.f32 0.2, %v2620_v19  ;;  %v1430_v24 = vrot.slane %v2620_v19, 4  ;;  %v1871_v30 = vmul.f32 %v1833_v8, %v1076_v38 }
 0x13c   :  { %v2326_v26 = vpop.eup %2325  ;;  %v979_v31 = vmul.f32 %v947_v10, %v2614_v6  ;;  %v1805_v34 = vadd.f32 %v1794_v25, %v1728_v23  ;;  %v2636_v36 = vmul.f32 %v1024_v15, %v2622_v20  ;;  %v1610_v39 = vrot.slane %v2594_v57, %v2504_v46 }
 0x13d   :  { %v2328_v33 = vpop.eup %2327  ;;  %v1273_v35 = vmul.f32 %v2326_v26, %v2520_v61  ;;  %v1253_v51 = vmul.f32 1.442695, %v1241_v29  ;;  %v1452_v38 = vsel %vm1383_vm0, %v1430_v24, %v2569_v22  ;;  %v913_v54 = vadd.f32 %v902_v41, %v2625_v21 }
 0x13e   :  { %v1958_v1 = vmul.f32 %v2328_v33, %v2520_v61  ;;  %1463 = vst [vmem:[#allocation7 + $0x60] sm:$0xff] %v1452_v38  ;;  %v2645_v0 = vmul.f32 %v1101_v17, %v2632_v32  ;;  %v1687_v2 = vrot.slane %v2594_v57, %v2506_v47  ;;  %v2649_v61 = vadd.f32 %v1871_v30, %v1805_v34 }
 0x13f   :  { %v1284_v55 = vmul.f32 0.5, %v1273_v35  ;;  %v1517_v62 = vrot.slane %v1273_v35, 4  ;;  %v2330_v3 = vpop.eup %2329  ;;  %2333 = vpow2.f32 %v1253_v51  ;;  %v1186_v13 = vmul.f32 %v1164_v7, %v2620_v19 }
 0x140   :  { %v1969_v5 = vmul.f32 0.5, %v1958_v1  ;;  %v2201_v8 = vrot.slane %v1958_v1, 4  ;;  %v1275_v10 = vmul.f32 %v2330_v3, %v2565_v52  ;;  %v1642_v14 = vmul.f32 %v1610_v39, %v847_v4 }
 0x141   :  { %v1306_v9 = vrot.slane %v1284_v55, 2  ;;  %v1540_v15 = vsel %vm1539_vm1, %v1484_v59, %v1517_v62  ;;  %v990_v25 = vadd.f32 %v979_v31, %v913_v54  ;;  %v1926_v4 = vmul.f32 0.2, %v2649_v61 }
 0x142   :  { %v1991_v41 = vrot.slane %v1969_v5, 2  ;;  %v2223_v23 = vsel %vm1539_vm1, %v2168_v18, %v2201_v8  ;;  %v1286_v24 = vmul.f32 0.5, %v1275_v10  ;;  %v1519_v30 = vrot.slane %v1275_v10, 4 }
 0x143   :  { %v2332_v17 = vpop.eup %2331  ;;  %v1328_v26 = vsub.f32 %v2576_v28, %v1306_v9  ;;  %v1339_v29 = vadd.f32 %v1306_v9, %v2576_v28  ;;  %v1719_v9 = vmul.f32 %v1687_v2, %v2614_v6 }
 0x144   :  { %v2013_v33 = vsub.f32 %v2598_v60, %v1991_v41  ;;  %v2024_v35 = vadd.f32 %v1991_v41, %v2598_v60  ;;  %v1960_v34 = vmul.f32 %v2332_v17, %v2565_v52  ;;  %v1308_v39 = vrot.slane %v1286_v24, 2 }
 0x145   :  { %v1361_v59 = vrot.slane %v1339_v29, 6  ;;  %v1384_v18 = vsel %vm1383_vm0, %v2537_v50, %v1328_v26  ;;  %v1551_v31 = vsel %vm1383_vm0, %v1540_v15, %v1328_v26  ;;  %v1542_v38 = vsel %vm1539_vm1, %v1486_v37, %v1519_v30 }
 0x146   :  { %v2046_v1 = vrot.slane %v2024_v35, 6  ;;  %v2068_v28 = vsel %vm1383_vm0, %v2539_v56, %v2013_v33  ;;  %v2234_v51 = vsel %vm1383_vm0, %v2223_v23, %v2013_v33  ;;  %v1330_v54 = vsub.f32 %v2601_v58, %v1308_v39 }
 0x147   :  { %v1396_v60 = vsel %vm1395_vm2, %v1384_v18, %v1361_v59  ;;  %v1562_v52 = vsel %vm1395_vm2, %v1551_v31, %v1361_v59  ;;  %v1341_v55 = vadd.f32 %v1308_v39, %v2601_v58  ;;  %v1971_v3 = vmul.f32 0.5, %v1960_v34 }
 0x148   :  { %1407 = vst [vmem:[#allocation7] sm:$0xff] %v1396_v60  ;;  %1573 = vst [vmem:[#allocation7 + $0xb0] sm:$0xff] %v1562_v52  ;;  %v2079_v50 = vsel %vm1395_vm2, %v2068_v28, %v2046_v1  ;;  %v2245_v62 = vsel %vm1395_vm2, %v2234_v51, %v2046_v1  ;;  %v2203_v56 = vrot.slane %v1960_v34, 4  ;;  %v1386_v37 = vsel %vm1383_vm0, %v2557_v12, %v1330_v54 }
 0x149   :  { %2091 = vst [vmem:[#allocation7 + $0x108] sm:$0xff] %v2079_v50  ;;  %2256 = vst [vmem:[#allocation7 + $0x1b8] sm:$0xff] %v2245_v62  ;;  %v1363_v5 = vrot.slane %v1341_v55, 6  ;;  %v1553_v8 = vsel %vm1383_vm0, %v1542_v38, %v1330_v54  ;;  %v1993_v10 = vrot.slane %v1971_v3, 2  ;;  %v1197_v58 = vmul.f32 0.1, %v1186_v13 }
 0x14a   :  { %v1938_v15 = vmul.f32 1.442695, %v1926_v4  ;;  %v2114_v41 = vrot.slane %v2649_v61, 4  ;;  %v2225_v26 = vsel %vm1539_vm1, %v2170_v63, %v2203_v56  ;;  %v1067_v29 = vadd.f32 %v2636_v36, %v990_v25 }
 0x14b   :  { %v1398_v23 = vsel %vm1395_vm2, %v1386_v37, %v1363_v5  ;;  %v1564_v17 = vsel %vm1395_vm2, %v1553_v8, %v1363_v5  ;;  %v2015_v12 = vsub.f32 %v2612_v11, %v1993_v10  ;;  %v2026_v6 = vadd.f32 %v1993_v10, %v2612_v11 }
 0x14c   :  { %1409 = vst [vmem:[#allocation7 + $0x10] sm:$0xff] %v1398_v23  ;;  %1575 = vst [vmem:[#allocation7 + $0xc0] sm:$0xff] %v1564_v17  ;;  %2335 = vpow2.f32 %v1938_v15  ;;  %v2136_v2 = vsel %vm1383_vm0, %v2114_v41, %v2569_v22  ;;  %v2334_v13 = vpop.eup %2333  ;;  %v2692_v24 = vadd.f32 %v2645_v0, %v1067_v29  ;;  %v1653_v30 = vadd.f32 %v1642_v14, %v2625_v21  ;;  %v2734_v17 = vld [vmem:[#allocation5 + $0x1e8] sm:$0xf] }
 0x14d   :  { %2147 = vst [vmem:[#allocation7 + $0x168] sm:$0xff] %v2136_v2  ;;  %v1764_v63 = vrot.slane %v2594_v57, %v2508_v48  ;;  %v1841_v36 = vrot.slane %v2594_v57, %v2510_v49  ;;  %v2048_v25 = vrot.slane %v2026_v6, 6  ;;  %v2070_v11 = vsel %vm1383_vm0, %v2561_v16, %v2015_v12  ;;  %v2742_v6 = vld [vmem:[#allocation5 + $0x1f0] sm:$0xf] }
 0x14e   :  { %v2236_v33 = vsel %vm1383_vm0, %v2225_v26, %v2015_v12  ;;  %v1274_v35 = vmul.f32 %v2334_v13, %v2569_v22  ;;  %v1230_v34 = vadd.f32 %v2569_v22, %v1197_v58  ;;  %v1243_v0 = vmul.f32 0.2, %v2692_v24  ;;  %v2736_v26 = vld [vmem:[#allocation5 + $0x1e0] sm:$0xf] }
 0x14f   :  { %v1432_v21 = vrot.slane %v2692_v24, 4  ;;  %v1730_v14 = vadd.f32 %v1719_v9, %v1653_v30  ;;  %v2081_v4 = vsel %vm1395_vm2, %v2070_v11, %v2048_v25  ;;  %v2247_v59 = vsel %vm1395_vm2, %v2236_v33, %v2048_v25  ;;  %v2728_v9 = vld [vmem:[#allocation5 + $0x1d8] sm:$0xf] }
 0x150   :  { %v1285_v57 = vmul.f32 0.5, %v1274_v35  ;;  %v1166_v18 = vrot.slane %v2573_v27, 6  ;;  %2093 = vst [vmem:[#allocation7 + $0x118] sm:$0xff] %v2081_v4  ;;  %2258 = vst [vmem:[#allocation7 + $0x1c8] sm:$0xff] %v2247_v59  ;;  %v1518_v16 = vrot.slane %v1274_v35, 4  ;;  %v1796_v1 = vmul.f32 %v1764_v63, %v2622_v20 }
 0x151   :  { %v1257_v31 = vmul.f32 1.442695, %v1243_v0  ;;  %v1454_v39 = vsel %vm1383_vm0, %v1432_v21, %v2588_v40  ;;  %v1893_v51 = vmul.f32 %v2649_v61, %v1164_v7  ;;  %v1873_v38 = vmul.f32 %v1841_v36, %v2632_v32  ;;  %v2744_v63 = vld [vmem:[#allocation5 + $0x208] sm:$0xf] }
 0x152   :  { %v1307_v28 = vrot.slane %v1285_v57, 2  ;;  %1465 = vst [vmem:[#allocation7 + $0x70] sm:$0xff] %v1454_v39  ;;  %v1485_v60 = vrot.slane %v1230_v34, 4  ;;  %v1807_v27 = vadd.f32 %v1796_v1, %v1730_v14  ;;  %v1188_v50 = vmul.f32 %v1166_v18, %v2692_v24 }
 0x153   :  { %2337 = vpow2.f32 %v1257_v31  ;;  %v1904_v3 = vmul.f32 0.1, %v1893_v51  ;;  %v1167_v29 = vrot.slane %v2728_v9, 6  ;;  %v2740_v12 = vrot.slane %v2728_v9, 4  ;;  %v925_v51 = vld [vmem:[#allocation5 + $0x78] sm:$0xff] }
 0x154   :  { %v1329_v52 = vsub.f32 %v1230_v34, %v1307_v28  ;;  %v1340_v54 = vadd.f32 %v1307_v28, %v1230_v34  ;;  %v1541_v55 = vsel %vm1539_vm1, %v1485_v60, %v1518_v16  ;;  %v2718_v62 = vadd.f32 %v1873_v38, %v1807_v27  ;;  %v848_v28 = vld [vmem:[#allocation5 + $0x20] sm:$0xff] }
 0x155   :  { %v1199_v58 = vmul.f32 0.1, %v1188_v50  ;;  %v1915_v41 = vadd.f32 %v1904_v3, %v2569_v22  ;;  %v1169_v36 = vrot.slane %v2734_v17, 6  ;;  %v2749_v25 = vrot.slane %v2734_v17, 4 }
 0x156   :  { %v1362_v20 = vrot.slane %v1340_v54, 6  ;;  %v1385_v53 = vsel %vm1383_vm0, %v2620_v19, %v1329_v52  ;;  %v1552_v7 = vsel %vm1383_vm0, %v1541_v55, %v1329_v52  ;;  %v1928_v32 = vmul.f32 0.2, %v2718_v62  ;;  %v1002_v52 = vld [vmem:[#allocation5 + $0xd0] sm:$0xff] }
 0x157   :  { %v2116_v56 = vrot.slane %v2718_v62, 4  ;;  %v1895_v8 = vmul.f32 %v2718_v62, %v1166_v18  ;;  %v1168_v11 = vrot.slane %v2736_v26, 6  ;;  %v2169_v35 = vrot.slane %v1915_v41, 4 }
 0x158   :  { %v1397_v5 = vsel %vm1395_vm2, %v1385_v53, %v1362_v20  ;;  %v1563_v37 = vsel %vm1395_vm2, %v1552_v7, %v1362_v20  ;;  %v1942_v19 = vmul.f32 1.442695, %v1928_v32  ;;  %v2753_v34 = vrot.slane %v2736_v26, 4  ;;  %v826_v53 = vld [vmem:[#allocation5 + $0x180] sm:$0xff]  ;;  %v1079_v7 = vld [vmem:[#allocation5 + $0x128] sm:$0xff] }
 0x159   :  { %v2336_v10 = vpop.eup %2335  ;;  %1408 = vst [vmem:[#allocation7 + $0x8] sm:$0xff] %v1397_v5  ;;  %1574 = vst [vmem:[#allocation7 + $0xb8] sm:$0xff] %v1563_v37  ;;  %v2138_v15 = vsel %vm1383_vm0, %v2116_v56, %v2588_v40  ;;  %v1906_v30 = vmul.f32 0.1, %v1895_v8  ;;  %v1170_v0 = vrot.slane %v2742_v6, 6  ;;  %v2757_v14 = vrot.slane %v2742_v6, 4 }
 0x15a   :  { %v1959_v23 = vmul.f32 %v2336_v10, %v2569_v22  ;;  %2149 = vst [vmem:[#allocation7 + $0x178] sm:$0xff] %v2138_v15  ;;  %2339 = vpow2.f32 %v1942_v19  ;;  %v1232_v22 = vadd.f32 %v2588_v40, %v1199_v58  ;;  %v1173_v4 = vrot.slane %v2744_v63, 6 }
 0x15b   :  { %v2761_v59 = vrot.slane %v2744_v63, 4  ;;  %v2765_v39 = vadd.f32 %v1906_v30, %v2588_v40 }
 0x15c   :  { %v1970_v2 = vmul.f32 0.5, %v1959_v23  ;;  %v2202_v13 = vrot.slane %v1959_v23, 4  ;;  %v1487_v21 = vrot.slane %v1232_v22, 4 }
 0x15d   :  { %v2171_v19 = vrot.slane %v2765_v39, 4 }
 0x15e   :  { %v1992_v33 = vrot.slane %v1970_v2, 2  ;;  %v2224_v31 = vsel %vm1539_vm1, %v2169_v35, %v2202_v13  ;;  %v2788_v13 = vld [vmem:[#allocation5 + $0x30] sm:$0xff] }
 0x160   :  { %v2338_v57 = vpop.eup %2337  ;;  %v2014_v18 = vsub.f32 %v1915_v41, %v1992_v33  ;;  %v2025_v16 = vadd.f32 %v1992_v33, %v1915_v41  ;;  %v2767_v1 = vpop.f32.mrf.mxu0 }
 0x161   :  { %v1276_v38 = vmul.f32 %v2338_v57, %v2588_v40  ;;  %v874_v60 = vrot.slane %v2767_v1, %v2496_v42  ;;  %v951_v27 = vrot.slane %v2767_v1, %v2498_v43  ;;  %v1028_v54 = vrot.slane %v2767_v1, %v2500_v44  ;;  %v2781_v8 = vpop.f32.mrf.mxu1 }
 0x162   :  { %v2047_v55 = vrot.slane %v2025_v16, 6  ;;  %v2069_v50 = vsel %vm1383_vm0, %v2649_v61, %v2014_v18  ;;  %v2235_v20 = vsel %vm1383_vm0, %v2224_v31, %v2014_v18  ;;  %v1105_v3 = vrot.slane %v2767_v1, %v2502_v45 }
 0x163   :  { %v1287_v32 = vmul.f32 0.5, %v1276_v38  ;;  %v1520_v56 = vrot.slane %v1276_v38, 4  ;;  %v903_v5 = vmul.f32 %v874_v60, %v848_v28  ;;  %v980_v37 = vmul.f32 %v951_v27, %v925_v51  ;;  %v2797_v60 = vld [vmem:[#allocation5 + $0x190] sm:$0xff] }
 0x164   :  { %v2080_v10 = vsel %vm1395_vm2, %v2069_v50, %v2047_v55  ;;  %v2246_v58 = vsel %vm1395_vm2, %v2235_v20, %v2047_v55  ;;  %v1057_v61 = vmul.f32 %v1028_v54, %v1002_v52  ;;  %v1134_v23 = vmul.f32 %v1105_v3, %v1079_v7 }
 0x165   :  { %2092 = vst [vmem:[#allocation7 + $0x110] sm:$0xff] %v2080_v10  ;;  %2257 = vst [vmem:[#allocation7 + $0x1c0] sm:$0xff] %v2246_v58  ;;  %v1309_v15 = vrot.slane %v1287_v32, 2  ;;  %v914_v41 = vadd.f32 %v903_v5, %v826_v53  ;;  %v1614_v2 = vrot.slane %v2767_v1, %v2504_v46  ;;  %v1543_v30 = vsel %vm1539_vm1, %v1487_v21, %v1520_v56  ;;  %v2806_v56 = vld [vmem:[#allocation5 + $0x88] sm:$0xff] }
 0x166   :  { %v1691_v33 = vrot.slane %v2767_v1, %v2506_v47  ;;  %v1768_v35 = vrot.slane %v2767_v1, %v2508_v48  ;;  %v882_v57 = vrot.slane %v2781_v8, %v2496_v42  ;;  %v1845_v21 = vrot.slane %v2767_v1, %v2510_v49 }
 0x167   :  { %v1331_v18 = vsub.f32 %v1232_v22, %v1309_v15  ;;  %v1342_v16 = vadd.f32 %v1309_v15, %v1232_v22  ;;  %v991_v31 = vadd.f32 %v980_v37, %v914_v41  ;;  %v1643_v38 = vmul.f32 %v1614_v2, %v848_v28  ;;  %v2340_v27 = vpop.eup %2339 }
 0x168   :  { %v1720_v54 = vmul.f32 %v1691_v33, %v925_v51  ;;  %v1797_v55 = vmul.f32 %v1768_v35, %v1002_v52  ;;  %v905_v50 = vmul.f32 %v882_v57, %v2788_v13  ;;  %v1961_v22 = vmul.f32 %v2340_v27, %v2588_v40 }
 0x169   :  { %v1364_v20 = vrot.slane %v1342_v16, 6  ;;  %v1387_v3 = vsel %vm1383_vm0, %v2692_v24, %v1331_v18  ;;  %v1554_v32 = vsel %vm1383_vm0, %v1543_v30, %v1331_v18  ;;  %v1068_v28 = vadd.f32 %v1057_v61, %v991_v31  ;;  %v1004_v61 = vld [vmem:[#allocation5 + $0xe0] sm:$0xff] }
 0x16a   :  { %v1654_v5 = vadd.f32 %v1643_v38, %v826_v53  ;;  %v916_v51 = vadd.f32 %v905_v50, %v2797_v60  ;;  %v959_v52 = vrot.slane %v2781_v8, %v2498_v43  ;;  %v1972_v10 = vmul.f32 0.5, %v1961_v22 }
 0x16b   :  { %v1399_v1 = vsel %vm1395_vm2, %v1387_v3, %v1364_v20  ;;  %v1565_v37 = vsel %vm1395_vm2, %v1554_v32, %v1364_v20  ;;  %v2204_v58 = vrot.slane %v1961_v22, 4  ;;  %v2813_v24 = vadd.f32 %v1134_v23, %v1068_v28 }
 0x16c   :  { %1410 = vst [vmem:[#allocation7 + $0x18] sm:$0xff] %v1399_v1  ;;  %1576 = vst [vmem:[#allocation7 + $0xc8] sm:$0xff] %v1565_v37  ;;  %v1731_v40 = vadd.f32 %v1720_v54, %v1654_v5  ;;  %v982_v15 = vmul.f32 %v959_v52, %v2806_v56  ;;  %v1036_v53 = vrot.slane %v2781_v8, %v2500_v44  ;;  %v1994_v41 = vrot.slane %v1972_v10, 2 }
 0x16d   :  { %v2226_v2 = vsel %vm1539_vm1, %v2171_v19, %v2204_v58  ;;  %v1874_v30 = vmul.f32 %v1845_v21, %v1079_v7  ;;  %v1113_v33 = vrot.slane %v2781_v8, %v2502_v45  ;;  %v1189_v35 = vmul.f32 %v1167_v29, %v2813_v24  ;;  %v1081_v21 = vld [vmem:[#allocation5 + $0x138] sm:$0xff] }
 0x16e   :  { %v1244_v23 = vmul.f32 0.2, %v2813_v24  ;;  %v1433_v57 = vrot.slane %v2813_v24, 4  ;;  %v1808_v18 = vadd.f32 %v1797_v55, %v1731_v40  ;;  %v2016_v16 = vsub.f32 %v2765_v39, %v1994_v41 }
 0x16f   :  { %v2027_v31 = vadd.f32 %v1994_v41, %v2765_v39  ;;  %v993_v38 = vadd.f32 %v982_v15, %v916_v51  ;;  %v1059_v27 = vmul.f32 %v1036_v53, %v1004_v61  ;;  %v1622_v50 = vrot.slane %v2781_v8, %v2504_v46  ;;  %v2858_v41 = vpop.f32.mrf.mxu0 }
 0x170   :  { %v1259_v19 = vmul.f32 1.442695, %v1244_v23  ;;  %v1455_v7 = vsel %vm1383_vm0, %v1433_v57, %v2740_v12  ;;  %v2830_v54 = vadd.f32 %v1874_v30, %v1808_v18  ;;  %v2071_v55 = vsel %vm1383_vm0, %v2718_v62, %v2016_v16  ;;  %v2844_v62 = vld [vmem:[#allocation5 + $0x1f8] sm:$0xf]  ;;  %v849_v18 = vld [vmem:[#allocation5 + $0x28] sm:$0xff] }
 0x171   :  { %v2049_v20 = vrot.slane %v2027_v31, 6  ;;  %v2237_v3 = vsel %vm1383_vm0, %v2226_v2, %v2016_v16  ;;  %1466 = vst [vmem:[#allocation7 + $0x78] sm:$0xff] %v1455_v7  ;;  %v1070_v39 = vadd.f32 %v1059_v27, %v993_v38  ;;  %v1200_v32 = vmul.f32 0.1, %v1189_v35 }
 0x172   :  { %2341 = vpow2.f32 %v1259_v19  ;;  %v1896_v22 = vmul.f32 %v2830_v54, %v1167_v29  ;;  %v1929_v28 = vmul.f32 0.2, %v2830_v54  ;;  %v2117_v52 = vrot.slane %v2830_v54, 4 }
 0x173   :  { %v2082_v5 = vsel %vm1395_vm2, %v2071_v55, %v2049_v20  ;;  %v2248_v51 = vsel %vm1395_vm2, %v2237_v3, %v2049_v20  ;;  %v1136_v1 = vmul.f32 %v1113_v33, %v1081_v21  ;;  %v1645_v58 = vmul.f32 %v1622_v50, %v2788_v13  ;;  %v827_v50 = vld [vmem:[#allocation5 + $0x188] sm:$0xff]  ;;  %v926_v20 = vld [vmem:[#allocation5 + $0x80] sm:$0xff]  ;;  %v1003_v3 = vld [vmem:[#allocation5 + $0xd8] sm:$0xff] }
 0x174   :  { %2094 = vst [vmem:[#allocation7 + $0x120] sm:$0xff] %v2082_v5  ;;  %2259 = vst [vmem:[#allocation7 + $0x1d0] sm:$0xff] %v2248_v51  ;;  %v1907_v37 = vmul.f32 0.1, %v1896_v22  ;;  %v1944_v10 = vmul.f32 1.442695, %v1929_v28  ;;  %v2139_v29 = vsel %vm1383_vm0, %v2117_v52, %v2740_v12  ;;  %v1699_v15 = vrot.slane %v2781_v8, %v2506_v47 }
 0x175   :  { %v2848_v9 = vrot.slane %v2844_v62, 4  ;;  %v2852_v40 = vadd.f32 %v1136_v1, %v1070_v39  ;;  %v1776_v53 = vrot.slane %v2781_v8, %v2508_v48  ;;  %v2861_v2 = vadd.f32 %v2740_v12, %v1200_v32  ;;  %2150 = vst [vmem:[#allocation7 + $0x180] sm:$0xff] %v2139_v29  ;;  %v1080_v22 = vld [vmem:[#allocation5 + $0x130] sm:$0xff] }
 0x176   :  { %2343 = vpow2.f32 %v1944_v10  ;;  %v1656_v13 = vadd.f32 %v1645_v58, %v2797_v60  ;;  %v1853_v30 = vrot.slane %v2781_v8, %v2510_v49  ;;  %v1722_v57 = vmul.f32 %v1699_v15, %v2806_v56  ;;  %v2896_v15 = vpop.f32.mrf.mxu1 }
 0x177   :  { %v1191_v33 = vmul.f32 %v1169_v36, %v2852_v40  ;;  %v1246_v35 = vmul.f32 0.2, %v2852_v40  ;;  %v1435_v23 = vrot.slane %v2852_v40, 4  ;;  %v2873_v16 = vadd.f32 %v1907_v37, %v2740_v12 }
 0x178   :  { %v1799_v31 = vmul.f32 %v1776_v53, %v1004_v61  ;;  %v1876_v38 = vmul.f32 %v1853_v30, %v1081_v21  ;;  %v878_v60 = vrot.slane %v2858_v41, %v2496_v42  ;;  %v1733_v7 = vadd.f32 %v1722_v57, %v1656_v13 }
 0x179   :  { %v1202_v8 = vmul.f32 0.1, %v1191_v33  ;;  %v1263_v27 = vmul.f32 1.442695, %v1246_v35  ;;  %v1457_v19 = vsel %vm1383_vm0, %v1435_v23, %v2749_v25  ;;  %v955_v56 = vrot.slane %v2858_v41, %v2498_v43 }
 0x17a   :  { %1468 = vst [vmem:[#allocation7 + $0x88] sm:$0xff] %v1457_v19  ;;  %v904_v55 = vmul.f32 %v878_v60, %v849_v18  ;;  %v1032_v61 = vrot.slane %v2858_v41, %v2500_v44  ;;  %v1109_v21 = vrot.slane %v2858_v41, %v2502_v45  ;;  %v1488_v39 = vrot.slane %v2861_v2, 4 }
 0x17b   :  { %2345 = vpow2.f32 %v1263_v27  ;;  %v1810_v32 = vadd.f32 %v1799_v31, %v1733_v7  ;;  %v1618_v28 = vrot.slane %v2858_v41, %v2504_v46  ;;  %v2172_v5 = vrot.slane %v2873_v16, 4 }
 0x17c   :  { %v2890_v51 = vadd.f32 %v2749_v25, %v1202_v8  ;;  %v915_v52 = vadd.f32 %v904_v55, %v827_v50  ;;  %v981_v1 = vmul.f32 %v955_v56, %v926_v20  ;;  %v1058_v10 = vmul.f32 %v1032_v61, %v1003_v3 }
 0x17d   :  { %v2892_v37 = vadd.f32 %v1876_v38, %v1810_v32  ;;  %v1644_v58 = vmul.f32 %v1618_v28, %v849_v18  ;;  %v1695_v29 = vrot.slane %v2858_v41, %v2506_v47  ;;  %v1135_v13 = vmul.f32 %v1109_v21, %v1080_v22 }
 0x17e   :  { %v992_v53 = vadd.f32 %v981_v1, %v915_v52  ;;  %v1772_v30 = vrot.slane %v2858_v41, %v2508_v48  ;;  %v1849_v33 = vrot.slane %v2858_v41, %v2510_v49  ;;  %v886_v27 = vrot.slane %v2896_v15, %v2496_v42 }
 0x17f   :  { %v2342_v35 = vpop.eup %2341  ;;  %v1898_v23 = vmul.f32 %v2892_v37, %v1169_v36  ;;  %v1931_v57 = vmul.f32 0.2, %v2892_v37  ;;  %v2119_v18 = vrot.slane %v2892_v37, 4  ;;  %v1655_v31 = vadd.f32 %v1644_v58, %v827_v50  ;;  %v2913_v36 = vld [vmem:[#allocation5 + $0x38] sm:$0xff] }
 0x180   :  { %v1277_v38 = vmul.f32 %v2342_v35, %v2740_v12  ;;  %v1069_v60 = vadd.f32 %v1058_v10, %v992_v53  ;;  %v1721_v8 = vmul.f32 %v1695_v29, %v926_v20  ;;  %v1490_v19 = vrot.slane %v2890_v51, 4 }
 0x181   :  { %v1909_v41 = vmul.f32 0.1, %v1898_v23  ;;  %v1948_v7 = vmul.f32 1.442695, %v1931_v57  ;;  %v2141_v17 = vsel %vm1383_vm0, %v2119_v18, %v2749_v25  ;;  %v1798_v32 = vmul.f32 %v1772_v30, %v1003_v3 }
 0x182   :  { %v1288_v55 = vmul.f32 0.5, %v1277_v38  ;;  %v1521_v56 = vrot.slane %v1277_v38, 4  ;;  %2152 = vst [vmem:[#allocation7 + $0x190] sm:$0xff] %v2141_v17  ;;  %v2915_v50 = vadd.f32 %v1135_v13, %v1069_v60  ;;  %v1732_v61 = vadd.f32 %v1721_v8, %v1655_v31 }
 0x183   :  { %v2344_v21 = vpop.eup %2343  ;;  %v2918_v20 = vadd.f32 %v1909_v41, %v2749_v25  ;;  %2347 = vpow2.f32 %v1948_v7  ;;  %v1875_v28 = vmul.f32 %v1849_v33, %v1080_v22  ;;  %v906_v10 = vmul.f32 %v886_v27, %v2913_v36 }
 0x184   :  { %v1310_v52 = vrot.slane %v1288_v55, 2  ;;  %v1962_v1 = vmul.f32 %v2344_v21, %v2740_v12  ;;  %v963_v58 = vrot.slane %v2896_v15, %v2498_v43  ;;  %v1190_v29 = vmul.f32 %v1168_v11, %v2915_v50 }
 0x185   :  { %v1245_v53 = vmul.f32 0.2, %v2915_v50  ;;  %v1434_v13 = vrot.slane %v2915_v50, 4  ;;  %v1809_v35 = vadd.f32 %v1798_v32, %v1732_v61  ;;  %v1544_v12 = vsel %vm1539_vm1, %v1488_v39, %v1521_v56 }
 0x186   :  { %v1332_v3 = vsub.f32 %v2861_v2, %v1310_v52  ;;  %v1343_v22 = vadd.f32 %v1310_v52, %v2861_v2  ;;  %v1973_v30 = vmul.f32 0.5, %v1962_v1  ;;  %v2205_v33 = vrot.slane %v1962_v1, 4 }
 0x187   :  { %v1261_v23 = vmul.f32 1.442695, %v1245_v53  ;;  %v1456_v57 = vsel %vm1383_vm0, %v1434_v13, %v2753_v34  ;;  %v2934_v18 = vadd.f32 %v1875_v28, %v1809_v35  ;;  %v2174_v39 = vrot.slane %v2918_v20, 4  ;;  %v2951_v28 = vld [vmem:[#allocation5 + $0x198] sm:$0xff]  ;;  %v928_v35 = vld [vmem:[#allocation5 + $0x90] sm:$0xff] }
 0x188   :  { %v2346_v31 = vpop.eup %2345  ;;  %v1365_v38 = vrot.slane %v1343_v22, 6  ;;  %v1388_v60 = vsel %vm1383_vm0, %v2813_v24, %v1332_v3  ;;  %v1555_v8 = vsel %vm1383_vm0, %v1544_v12, %v1332_v3  ;;  %v1995_v27 = vrot.slane %v1973_v30, 2  ;;  %1467 = vst [vmem:[#allocation7 + $0x80] sm:$0xff] %v1456_v57  ;;  %v1082_v57 = vld [vmem:[#allocation5 + $0x140] sm:$0xff] }
 0x189   :  { %v1279_v2 = vmul.f32 %v2346_v31, %v2749_v25  ;;  %v1201_v41 = vmul.f32 0.1, %v1190_v29  ;;  %2349 = vpow2.f32 %v1261_v23  ;;  %v2227_v24 = vsel %vm1539_vm1, %v2172_v5, %v2205_v33  ;;  %v1005_v23 = vld [vmem:[#allocation5 + $0xe8] sm:$0xff]  ;;  %v2317_v31 = vpop.f32.mrf.mxu1 }
 0x18a   :  { %v1400_v7 = vsel %vm1395_vm2, %v1388_v60, %v1365_v38  ;;  %v1566_v17 = vsel %vm1395_vm2, %v1555_v8, %v1365_v38  ;;  %v2017_v55 = vsub.f32 %v2873_v16, %v1995_v27  ;;  %v2028_v56 = vadd.f32 %v1995_v27, %v2873_v16 }
 0x18b   :  { %1411 = vst [vmem:[#allocation7 + $0x20] sm:$0xff] %v1400_v7  ;;  %1577 = vst [vmem:[#allocation7 + $0xd0] sm:$0xff] %v1566_v17  ;;  %v1290_v61 = vmul.f32 0.5, %v1279_v2  ;;  %v1523_v21 = vrot.slane %v1279_v2, 4  ;;  %v1897_v32 = vmul.f32 %v2934_v18, %v1168_v11  ;;  %v1930_v53 = vmul.f32 0.2, %v2934_v18 }
 0x18c   :  { %v2050_v52 = vrot.slane %v2028_v56, 6  ;;  %v2072_v1 = vsel %vm1383_vm0, %v2830_v54, %v2017_v55  ;;  %v2238_v29 = vsel %vm1383_vm0, %v2227_v24, %v2017_v55  ;;  %v2959_v5 = vadd.f32 %v2753_v34, %v1201_v41 }
 0x18d   :  { %v1312_v13 = vrot.slane %v1290_v61, 2  ;;  %v1546_v16 = vsel %vm1539_vm1, %v1490_v19, %v1523_v21  ;;  %v2118_v26 = vrot.slane %v2934_v18, 4  ;;  %v1946_v22 = vmul.f32 1.442695, %v1930_v53 }
 0x18e   :  { %v2083_v11 = vsel %vm1395_vm2, %v2072_v1, %v2050_v52  ;;  %v2249_v3 = vsel %vm1395_vm2, %v2238_v29, %v2050_v52  ;;  %v917_v54 = vadd.f32 %v906_v10, %v2951_v28  ;;  %v1908_v19 = vmul.f32 0.1, %v1897_v32  ;;  %v2318_v32 = vpop.f32.mrf.mxu1 }
 0x18f   :  { %2095 = vst [vmem:[#allocation7 + $0x128] sm:$0xff] %v2083_v11  ;;  %2260 = vst [vmem:[#allocation7 + $0x1d8] sm:$0xff] %v2249_v3  ;;  %v1334_v12 = vsub.f32 %v2890_v51, %v1312_v13  ;;  %v1345_v30 = vadd.f32 %v1312_v13, %v2890_v51  ;;  %v2140_v33 = vsel %vm1383_vm0, %v2118_v26, %v2753_v34  ;;  %2351 = vpow2.f32 %v1946_v22 }
 0x190   :  { %v2348_v38 = vpop.eup %2347  ;;  %2151 = vst [vmem:[#allocation7 + $0x188] sm:$0xff] %v2140_v33  ;;  %v983_v60 = vmul.f32 %v963_v58, %v928_v35  ;;  %v1040_v10 = vrot.slane %v2896_v15, %v2500_v44  ;;  %v1117_v8 = vrot.slane %v2896_v15, %v2502_v45  ;;  %v1489_v7 = vrot.slane %v2959_v5, 4 }
 0x191   :  { %v1367_v27 = vrot.slane %v1345_v30, 6  ;;  %v1390_v51 = vsel %vm1383_vm0, %v2852_v40, %v1334_v12  ;;  %v1557_v2 = vsel %vm1383_vm0, %v1546_v16, %v1334_v12  ;;  %v1964_v41 = vmul.f32 %v2348_v38, %v2749_v25 }
 0x192   :  { %v994_v17 = vadd.f32 %v983_v60, %v917_v54  ;;  %v1060_v55 = vmul.f32 %v1040_v10, %v1005_v23  ;;  %v1137_v56 = vmul.f32 %v1117_v8, %v1082_v57  ;;  %v1626_v40 = vrot.slane %v2896_v15, %v2504_v46 }
 0x193   :  { %v1402_v58 = vsel %vm1395_vm2, %v1390_v51, %v1367_v27  ;;  %v1568_v24 = vsel %vm1395_vm2, %v1557_v2, %v1367_v27  ;;  %v1975_v61 = vmul.f32 0.5, %v1964_v41  ;;  %v2207_v21 = vrot.slane %v1964_v41, 4 }
 0x194   :  { %1413 = vst [vmem:[#allocation7 + $0x30] sm:$0xff] %v1402_v58  ;;  %1579 = vst [vmem:[#allocation7 + $0xe0] sm:$0xff] %v1568_v24  ;;  %v1071_v52 = vadd.f32 %v1060_v55, %v994_v17  ;;  %v1703_v25 = vrot.slane %v2896_v15, %v2506_v47  ;;  %v1780_v1 = vrot.slane %v2896_v15, %v2508_v48  ;;  %v854_v17 = vld [vmem:[#allocation5 + $0x50] sm:$0xff] }
 0x195   :  { %v1997_v29 = vrot.slane %v1975_v61, 2  ;;  %v2229_v53 = vsel %vm1539_vm1, %v2174_v39, %v2207_v21  ;;  %v2990_v13 = vadd.f32 %v1908_v19, %v2753_v34  ;;  %v1857_v16 = vrot.slane %v2896_v15, %v2510_v49  ;;  %v832_v21 = vld [vmem:[#allocation5 + $0x1b0] sm:$0xff] }
 0x196   :  { %v2350_v26 = vpop.eup %2349  ;;  %v2994_v11 = vadd.f32 %v1137_v56, %v1071_v52  ;;  %v1646_v3 = vmul.f32 %v1626_v40, %v2913_v36  ;;  %v1723_v22 = vmul.f32 %v1703_v25, %v928_v35  ;;  %v2997_v54 = vadd.f32 %v2318_v32, %v2317_v31  ;;  %v931_v32 = vld [vmem:[#allocation5 + $0xa8] sm:$0xff] }
 0x197   :  { %v2019_v12 = vsub.f32 %v2918_v20, %v1997_v29  ;;  %v2030_v30 = vadd.f32 %v1997_v29, %v2918_v20  ;;  %v1278_v39 = vmul.f32 %v2350_v26, %v2753_v34  ;;  %v1800_v33 = vmul.f32 %v1780_v1, %v1005_v23 }
 0x198   :  { %v1192_v19 = vmul.f32 %v1170_v0, %v2994_v11  ;;  %v1247_v15 = vmul.f32 0.2, %v2994_v11  ;;  %v1436_v38 = vrot.slane %v2994_v11, 4  ;;  %v1657_v36 = vadd.f32 %v1646_v3, %v2951_v28 }
 0x199   :  { %v2052_v35 = vrot.slane %v2030_v30, 6  ;;  %v2074_v31 = vsel %vm1383_vm0, %v2892_v37, %v2019_v12  ;;  %v2240_v60 = vsel %vm1383_vm0, %v2229_v53, %v2019_v12  ;;  %v1289_v20 = vmul.f32 0.5, %v1278_v39 }
 0x19a   :  { %v1522_v10 = vrot.slane %v1278_v39, 4  ;;  %v1265_v8 = vmul.f32 1.442695, %v1247_v15  ;;  %v1458_v23 = vsel %vm1383_vm0, %v1436_v38, %v2757_v14  ;;  %v1877_v27 = vmul.f32 %v1857_v16, %v1082_v57  ;;  %v1008_v39 = vld [vmem:[#allocation5 + $0x100] sm:$0xff] }
 0x19b   :  { %v2085_v51 = vsel %vm1395_vm2, %v2074_v31, %v2052_v35  ;;  %v2251_v2 = vsel %vm1395_vm2, %v2240_v60, %v2052_v35  ;;  %v1311_v41 = vrot.slane %v1289_v20, 2  ;;  %1469 = vst [vmem:[#allocation7 + $0x90] sm:$0xff] %v1458_v23  ;;  %v1734_v28 = vadd.f32 %v1723_v22, %v1657_v36  ;;  %v1085_v35 = vld [vmem:[#allocation5 + $0x158] sm:$0xff] }
 0x19c   :  { %2097 = vst [vmem:[#allocation7 + $0x138] sm:$0xff] %v2085_v51  ;;  %2262 = vst [vmem:[#allocation7 + $0x1e8] sm:$0xff] %v2251_v2  ;;  %v2173_v37 = vrot.slane %v2990_v13, 4  ;;  %v1203_v55 = vmul.f32 0.1, %v1192_v19  ;;  %2353 = vpow2.f32 %v1265_v8  ;;  %v898_v56 = vrot.slane %v2997_v54, %v2496_v42  ;;  %v2352_v58 = vpop.eup %2351 }
 0x19d   :  { %v1333_v57 = vsub.f32 %v2959_v5, %v1311_v41  ;;  %v1344_v24 = vadd.f32 %v1311_v41, %v2959_v5  ;;  %v1811_v61 = vadd.f32 %v1800_v33, %v1734_v28  ;;  %v975_v52 = vrot.slane %v2997_v54, %v2498_v43 }
 0x19e   :  { %v1545_v40 = vsel %vm1539_vm1, %v1489_v7, %v1522_v10  ;;  %v1963_v25 = vmul.f32 %v2352_v58, %v2753_v34  ;;  %v909_v1 = vmul.f32 %v898_v56, %v854_v17  ;;  %v1052_v29 = vrot.slane %v2997_v54, %v2500_v44 }
 0x19f   :  { %v1366_v53 = vrot.slane %v1344_v24, 6  ;;  %v1389_v16 = vsel %vm1383_vm0, %v2915_v50, %v1333_v57  ;;  %v1556_v5 = vsel %vm1383_vm0, %v1545_v40, %v1333_v57  ;;  %v3029_v26 = vadd.f32 %v1877_v27, %v1811_v61 }
 0x1a0   :  { %v1974_v3 = vmul.f32 0.5, %v1963_v25  ;;  %v2206_v22 = vrot.slane %v1963_v25, 4  ;;  %v920_v12 = vadd.f32 %v909_v1, %v832_v21  ;;  %v986_v30 = vmul.f32 %v975_v52, %v931_v32 }
 0x1a1   :  { %v1401_v7 = vsel %vm1395_vm2, %v1389_v16, %v1366_v53  ;;  %v1567_v34 = vsel %vm1395_vm2, %v1556_v5, %v1366_v53  ;;  %v1899_v33 = vmul.f32 %v3029_v26, %v1170_v0  ;;  %v1932_v19 = vmul.f32 0.2, %v3029_v26  ;;  %v3060_v24 = vpop.f32.mrf.mxu0  ;;  %v852_v16 = vld [vmem:[#allocation5 + $0x40] sm:$0xff] }
 0x1a2   :  { %1412 = vst [vmem:[#allocation7 + $0x28] sm:$0xff] %v1401_v7  ;;  %1578 = vst [vmem:[#allocation7 + $0xd8] sm:$0xff] %v1567_v34  ;;  %v1996_v50 = vrot.slane %v1974_v3, 2  ;;  %v3038_v15 = vadd.f32 %v2757_v14, %v1203_v55  ;;  %v2120_v38 = vrot.slane %v3029_v26, 4  ;;  %v997_v36 = vadd.f32 %v986_v30, %v920_v12  ;;  %v830_v34 = vld [vmem:[#allocation5 + $0x1a0] sm:$0xff] }
 0x1a3   :  { %v2228_v31 = vsel %vm1539_vm1, %v2173_v37, %v2206_v22  ;;  %v1950_v60 = vmul.f32 1.442695, %v1932_v19  ;;  %v1063_v20 = vmul.f32 %v1052_v29, %v1008_v39  ;;  %v1129_v6 = vrot.slane %v2997_v54, %v2502_v45 }
 0x1a4   :  { %v2018_v0 = vsub.f32 %v2990_v13, %v1996_v50  ;;  %v2029_v10 = vadd.f32 %v1996_v50, %v2990_v13  ;;  %v2142_v8 = vsel %vm1383_vm0, %v2120_v38, %v2757_v14  ;;  %v1638_v23 = vrot.slane %v2997_v54, %v2504_v46 }
 0x1a5   :  { %v1910_v27 = vmul.f32 0.1, %v1899_v33  ;;  %2355 = vpow2.f32 %v1950_v60  ;;  %2153 = vst [vmem:[#allocation7 + $0x198] sm:$0xff] %v2142_v8  ;;  %v1074_v51 = vadd.f32 %v1063_v20, %v997_v36  ;;  %v1140_v2 = vmul.f32 %v1129_v6, %v1085_v35  ;;  %v3079_v33 = vld [vmem:[#allocation5 + $0x98] sm:$0xff] }
 0x1a6   :  { %v2051_v41 = vrot.slane %v2029_v10, 6  ;;  %v2073_v28 = vsel %vm1383_vm0, %v2934_v18, %v2018_v0  ;;  %v2239_v37 = vsel %vm1383_vm0, %v2228_v31, %v2018_v0  ;;  %v1649_v55 = vmul.f32 %v1638_v23, %v854_v17  ;;  %v3089_v10 = vld [vmem:[#allocation5 + $0x148] sm:$0xff] }
 0x1a7   :  { %v1491_v13 = vrot.slane %v3038_v15, 4  ;;  %v3054_v56 = vadd.f32 %v1140_v2, %v1074_v51  ;;  %v1715_v58 = vrot.slane %v2997_v54, %v2506_v47  ;;  %v1792_v57 = vrot.slane %v2997_v54, %v2508_v48 }
 0x1a8   :  { %v2084_v61 = vsel %vm1395_vm2, %v2073_v28, %v2051_v41  ;;  %v2250_v52 = vsel %vm1395_vm2, %v2239_v37, %v2051_v41  ;;  %v1660_v18 = vadd.f32 %v1649_v55, %v832_v21  ;;  %v1869_v17 = vrot.slane %v2997_v54, %v2510_v49 }
 0x1a9   :  { %v2354_v40 = vpop.eup %2353  ;;  %2096 = vst [vmem:[#allocation7 + $0x130] sm:$0xff] %v2084_v61  ;;  %2261 = vst [vmem:[#allocation7 + $0x1e0] sm:$0xff] %v2250_v52  ;;  %v3067_v25 = vadd.f32 %v1910_v27, %v2757_v14  ;;  %v1250_v1 = vmul.f32 0.2, %v3054_v56  ;;  %v1439_v29 = vrot.slane %v3054_v56, 4  ;;  %v1726_v53 = vmul.f32 %v1715_v58, %v931_v32 }
 0x1aa   :  { %v1280_v5 = vmul.f32 %v2354_v40, %v2757_v14  ;;  %v1195_v21 = vmul.f32 %v1173_v4, %v3054_v56  ;;  %v1803_v3 = vmul.f32 %v1792_v57, %v1008_v39  ;;  %v890_v54 = vrot.slane %v3060_v24, %v2496_v42  ;;  %v3083_v39 = vld [vmem:[#allocation5 + $0xf0] sm:$0xff] }
 0x1ab   :  { %v1271_v22 = vmul.f32 1.442695, %v1250_v1  ;;  %v1461_v12 = vsel %vm1383_vm0, %v1439_v29, %v2761_v59  ;;  %v1737_v30 = vadd.f32 %v1726_v53, %v1660_v18  ;;  %v1880_v7 = vmul.f32 %v1869_v17, %v1085_v35 }
 0x1ac   :  { %v1291_v32 = vmul.f32 0.5, %v1280_v5  ;;  %v1524_v19 = vrot.slane %v1280_v5, 4  ;;  %1472 = vst [vmem:[#allocation7 + $0xa8] sm:$0xff] %v1461_v12  ;;  %v907_v50 = vmul.f32 %v890_v54, %v852_v16  ;;  %v967_v38 = vrot.slane %v3060_v24, %v2498_v43 }
 0x1ad   :  { %v2175_v36 = vrot.slane %v3067_v25, 4  ;;  %2357 = vpow2.f32 %v1271_v22  ;;  %v1814_v31 = vadd.f32 %v1803_v3, %v1737_v30  ;;  %v1044_v60 = vrot.slane %v3060_v24, %v2500_v44 }
 0x1ae   :  { %v1313_v35 = vrot.slane %v1291_v32, 2  ;;  %v1206_v20 = vmul.f32 0.1, %v1195_v21  ;;  %v918_v6 = vadd.f32 %v907_v50, %v830_v34  ;;  %v984_v0 = vmul.f32 %v967_v38, %v3079_v33 }
 0x1af   :  { %v1547_v8 = vsel %vm1539_vm1, %v1491_v13, %v1524_v19  ;;  %v3092_v23 = vadd.f32 %v1880_v7, %v1814_v31  ;;  %v1061_v27 = vmul.f32 %v1044_v60, %v3083_v39  ;;  %v1121_v51 = vrot.slane %v3060_v24, %v2502_v45 }
 0x1b0   :  { %v1335_v2 = vsub.f32 %v3038_v15, %v1313_v35  ;;  %v1346_v41 = vadd.f32 %v1313_v35, %v3038_v15  ;;  %v995_v28 = vadd.f32 %v984_v0, %v918_v6  ;;  %v1630_v37 = vrot.slane %v3060_v24, %v2504_v46  ;;  %v853_v0 = vld [vmem:[#allocation5 + $0x48] sm:$0xff] }
 0x1b1   :  { %v1902_v55 = vmul.f32 %v3092_v23, %v1173_v4  ;;  %v1935_v13 = vmul.f32 0.2, %v3092_v23  ;;  %v2123_v58 = vrot.slane %v3092_v23, 4  ;;  %v1138_v57 = vmul.f32 %v1121_v51, %v3089_v10 }
 0x1b2   :  { %v2356_v61 = vpop.eup %2355  ;;  %v1368_v52 = vrot.slane %v1346_v41, 6  ;;  %v1391_v18 = vsel %vm1383_vm0, %v2994_v11, %v1335_v2  ;;  %v1558_v15 = vsel %vm1383_vm0, %v1547_v8, %v1335_v2  ;;  %v1072_v17 = vadd.f32 %v1061_v27, %v995_v28  ;;  %v831_v28 = vld [vmem:[#allocation5 + $0x1a8] sm:$0xff] }
 0x1b3   :  { %v1965_v40 = vmul.f32 %v2356_v61, %v2757_v14  ;;  %v3112_v63 = vadd.f32 %v2761_v59, %v1206_v20  ;;  %v1956_v4 = vmul.f32 1.442695, %v1935_v13  ;;  %v2145_v1 = vsel %vm1383_vm0, %v2123_v58, %v2761_v59 }
 0x1b4   :  { %v1403_v29 = vsel %vm1395_vm2, %v1391_v18, %v1368_v52  ;;  %v1569_v53 = vsel %vm1395_vm2, %v1558_v15, %v1368_v52  ;;  %2156 = vst [vmem:[#allocation7 + $0x1b0] sm:$0xff] %v2145_v1  ;;  %v3118_v5 = vadd.f32 %v1138_v57, %v1072_v17  ;;  %v1647_v11 = vmul.f32 %v1630_v37, %v852_v16  ;;  %v3126_v16 = vpop.f32.mrf.mxu0  ;;  %v930_v52 = vld [vmem:[#allocation5 + $0xa0] sm:$0xff]  ;;  %v3156_v17 = vld [vmem:[#allocation5 + $0xf8] sm:$0xff] }
 0x1b5   :  { %1414 = vst [vmem:[#allocation7 + $0x38] sm:$0xff] %v1403_v29  ;;  %1580 = vst [vmem:[#allocation7 + $0xe8] sm:$0xff] %v1569_v53  ;;  %v1976_v21 = vmul.f32 0.5, %v1965_v40  ;;  %v2208_v3 = vrot.slane %v1965_v40, 4  ;;  %v1913_v14 = vmul.f32 0.1, %v1902_v55  ;;  %2359 = vpow2.f32 %v1956_v4 }
 0x1b6   :  { %v1171_v54 = vrot.slane %v2844_v62, 6  ;;  %v1248_v22 = vmul.f32 0.2, %v3118_v5  ;;  %v1437_v12 = vrot.slane %v3118_v5, 4  ;;  %v1494_v7 = vrot.slane %v3112_v63, 4 }
 0x1b7   :  { %v1998_v30 = vrot.slane %v1976_v21, 2  ;;  %v1658_v32 = vadd.f32 %v1647_v11, %v830_v34  ;;  %v1707_v19 = vrot.slane %v3060_v24, %v2506_v47  ;;  %v2230_v50 = vsel %vm1539_vm1, %v2175_v36, %v2208_v3 }
 0x1b8   :  { %v1267_v38 = vmul.f32 1.442695, %v1248_v22  ;;  %v1459_v31 = vsel %vm1383_vm0, %v1437_v12, %v2848_v9  ;;  %v1784_v60 = vrot.slane %v3060_v24, %v2508_v48  ;;  %v3136_v34 = vadd.f32 %v1913_v14, %v2761_v59  ;;  %v1084_v14 = vld [vmem:[#allocation5 + $0x150] sm:$0xff] }
 0x1b9   :  { %v2020_v35 = vsub.f32 %v3067_v25, %v1998_v30  ;;  %v2031_v20 = vadd.f32 %v1998_v30, %v3067_v25  ;;  %1470 = vst [vmem:[#allocation7 + $0x98] sm:$0xff] %v1459_v31  ;;  %v1861_v6 = vrot.slane %v3060_v24, %v2510_v49  ;;  %v1193_v8 = vmul.f32 %v1171_v54, %v3118_v5 }
 0x1ba   :  { %v2358_v36 = vpop.eup %2357  ;;  %2361 = vpow2.f32 %v1267_v38  ;;  %v1724_v27 = vmul.f32 %v1707_v19, %v3079_v33  ;;  %v894_v51 = vrot.slane %v3126_v16, %v2496_v42  ;;  %v1801_v55 = vmul.f32 %v1784_v60, %v3083_v39 }
 0x1bb   :  { %v2053_v25 = vrot.slane %v2031_v20, 6  ;;  %v2075_v2 = vsel %vm1383_vm0, %v3029_v26, %v2020_v35  ;;  %v2241_v41 = vsel %vm1383_vm0, %v2230_v50, %v2020_v35  ;;  %v1283_v24 = vmul.f32 %v2358_v36, %v2761_v59 }
 0x1bc   :  { %v1735_v37 = vadd.f32 %v1724_v27, %v1658_v32  ;;  %v1878_v13 = vmul.f32 %v1861_v6, %v3089_v10  ;;  %v908_v58 = vmul.f32 %v894_v51, %v853_v0  ;;  %v971_v15 = vrot.slane %v3126_v16, %v2498_v43 }
 0x1bd   :  { %v2086_v33 = vsel %vm1395_vm2, %v2075_v2, %v2053_v25  ;;  %v2252_v57 = vsel %vm1395_vm2, %v2241_v41, %v2053_v25  ;;  %v1294_v42 = vmul.f32 0.5, %v1283_v24  ;;  %v1527_v61 = vrot.slane %v1283_v24, 4 }
 0x1be   :  { %2098 = vst [vmem:[#allocation7 + $0x140] sm:$0xff] %v2086_v33  ;;  %2263 = vst [vmem:[#allocation7 + $0x1f0] sm:$0xff] %v2252_v57  ;;  %v1812_v26 = vadd.f32 %v1801_v55, %v1735_v37  ;;  %v919_v18 = vadd.f32 %v908_v58, %v831_v28  ;;  %v1048_v39 = vrot.slane %v3126_v16, %v2500_v44  ;;  %v2178_v40 = vrot.slane %v3136_v34, 4 }
 0x1bf   :  { %v1316_v10 = vrot.slane %v1294_v42, 2  ;;  %v1204_v4 = vmul.f32 0.1, %v1193_v8  ;;  %v1634_v1 = vrot.slane %v3126_v16, %v2504_v46  ;;  %v1550_v29 = vsel %vm1539_vm1, %v1494_v7, %v1527_v61 }
 0x1c0   :  { %v3164_v53 = vadd.f32 %v1878_v13, %v1812_v26  ;;  %v985_v11 = vmul.f32 %v971_v15, %v930_v52  ;;  %v1125_v43 = vrot.slane %v3126_v16, %v2502_v45  ;;  %v1062_v44 = vmul.f32 %v1048_v39, %v3156_v17 }
 0x1c1   :  { %v1338_v21 = vsub.f32 %v3112_v63, %v1316_v10  ;;  %v1349_v3 = vadd.f32 %v1316_v10, %v3112_v63  ;;  %v1711_v22 = vrot.slane %v3126_v16, %v2506_v47  ;;  %v1648_v32 = vmul.f32 %v1634_v1, %v853_v0 }
 0x1c2   :  { %v2360_v12 = vpop.eup %2359  ;;  %v1933_v46 = vmul.f32 0.2, %v3164_v53  ;;  %v2121_v30 = vrot.slane %v3164_v53, 4  ;;  %v996_v7 = vadd.f32 %v985_v11, %v919_v18  ;;  %v1139_v60 = vmul.f32 %v1125_v43, %v1084_v14 }
 0x1c3   :  { %v1371_v19 = vrot.slane %v1349_v3, 6  ;;  %v1394_v45 = vsel %vm1383_vm0, %v3054_v56, %v1338_v21  ;;  %v1561_v50 = vsel %vm1383_vm0, %v1550_v29, %v1338_v21  ;;  %v1968_v63 = vmul.f32 %v2360_v12, %v2761_v59  ;;  %v3183_v56 = vld [vmem:[#allocation5 + $0x200] sm:$0xf] }
 0x1c4   :  { %v1952_v38 = vmul.f32 1.442695, %v1933_v46  ;;  %v2143_v31 = vsel %vm1383_vm0, %v2121_v30, %v2848_v9  ;;  %v1073_v47 = vadd.f32 %v1062_v44, %v996_v7  ;;  %v1659_v59 = vadd.f32 %v1648_v32, %v831_v28 }
 0x1c5   :  { %v1406_v35 = vsel %vm1395_vm2, %v1394_v45, %v1371_v19  ;;  %v1572_v20 = vsel %vm1395_vm2, %v1561_v50, %v1371_v19  ;;  %v1979_v6 = vmul.f32 0.5, %v1968_v63  ;;  %v2211_v0 = vrot.slane %v1968_v63, 4  ;;  %2154 = vst [vmem:[#allocation7 + $0x1a0] sm:$0xff] %v2143_v31 }
 0x1c6   :  { %1417 = vst [vmem:[#allocation7 + $0x50] sm:$0xff] %v1406_v35  ;;  %1583 = vst [vmem:[#allocation7 + $0x100] sm:$0xff] %v1572_v20  ;;  %2363 = vpow2.f32 %v1952_v38  ;;  %v3185_v36 = vadd.f32 %v1139_v60, %v1073_v47  ;;  %v1237_v51 = vadd.f32 %v2848_v9, %v1204_v4  ;;  %v3189_v25 = vrot.slane %v3183_v56, 4 }
 0x1c7   :  { %v2362_v8 = vpop.eup %2361  ;;  %v2001_v27 = vrot.slane %v1979_v6, 2  ;;  %v2233_v2 = vsel %vm1539_vm1, %v2178_v40, %v2211_v0  ;;  %v1725_v37 = vmul.f32 %v1711_v22, %v930_v52  ;;  %v1788_v58 = vrot.slane %v3126_v16, %v2508_v48 }
 0x1c8   :  { %v1281_v41 = vmul.f32 %v2362_v8, %v2848_v9  ;;  %v1249_v24 = vmul.f32 0.2, %v3185_v36  ;;  %v1438_v28 = vrot.slane %v3185_v36, 4  ;;  %v1900_v10 = vmul.f32 %v3164_v53, %v1171_v54 }
 0x1c9   :  { %v2023_v55 = vsub.f32 %v3136_v34, %v2001_v27  ;;  %v2034_v13 = vadd.f32 %v2001_v27, %v3136_v34  ;;  %v1736_v61 = vadd.f32 %v1725_v37, %v1659_v59  ;;  %v1492_v34 = vrot.slane %v1237_v51, 4 }
 0x1ca   :  { %v1292_v33 = vmul.f32 0.5, %v1281_v41  ;;  %v1525_v57 = vrot.slane %v1281_v41, 4  ;;  %v1269_v42 = vmul.f32 1.442695, %v1249_v24  ;;  %v1460_v52 = vsel %vm1383_vm0, %v1438_v28, %v3189_v25 }
 0x1cb   :  { %v2056_v26 = vrot.slane %v2034_v13, 6  ;;  %v2078_v18 = vsel %vm1383_vm0, %v3092_v23, %v2023_v55  ;;  %v2244_v15 = vsel %vm1383_vm0, %v2233_v2, %v2023_v55  ;;  %1471 = vst [vmem:[#allocation7 + $0xa0] sm:$0xff] %v1460_v52  ;;  %v1802_v4 = vmul.f32 %v1788_v58, %v3156_v17 }
 0x1cc   :  { %v1314_v39 = vrot.slane %v1292_v33, 2  ;;  %2365 = vpow2.f32 %v1269_v42  ;;  %v1865_v23 = vrot.slane %v3126_v16, %v2510_v49  ;;  %v1548_v11 = vsel %vm1539_vm1, %v1492_v34, %v1525_v57 }
 0x1cd   :  { %v2089_v48 = vsel %vm1395_vm2, %v2078_v18, %v2056_v26  ;;  %v2255_v40 = vsel %vm1395_vm2, %v2244_v15, %v2056_v26  ;;  %v1172_v62 = vrot.slane %v3183_v56, 6  ;;  %v1813_v54 = vadd.f32 %v1802_v4, %v1736_v61 }
 0x1ce   :  { %2101 = vst [vmem:[#allocation7 + $0x158] sm:$0xff] %v2089_v48  ;;  %2266 = vst [vmem:[#allocation7 + $0x208] sm:$0xff] %v2255_v40  ;;  %v1336_v1 = vsub.f32 %v1237_v51, %v1314_v39  ;;  %v1347_v29 = vadd.f32 %v1314_v39, %v1237_v51  ;;  %v1879_v43 = vmul.f32 %v1865_v23, %v1084_v14  ;;  %v1911_v17 = vmul.f32 0.1, %v1900_v10 }
 0x1cf   :  { %v1194_v46 = vmul.f32 %v1172_v62, %v3185_v36 }
 0x1d0   :  { %v1369_v21 = vrot.slane %v1347_v29, 6  ;;  %v1392_v3 = vsel %vm1383_vm0, %v3118_v5, %v1336_v1  ;;  %v1559_v44 = vsel %vm1383_vm0, %v1548_v11, %v1336_v1  ;;  %v3217_v22 = vadd.f32 %v1879_v43, %v1813_v54 }
 0x1d1   :  { %v1922_v7 = vadd.f32 %v1911_v17, %v2848_v9  ;;  %v1205_v63 = vmul.f32 0.1, %v1194_v46 }
 0x1d2   :  { %v1404_v49 = vsel %vm1395_vm2, %v1392_v3, %v1369_v21  ;;  %v1570_v16 = vsel %vm1395_vm2, %v1559_v44, %v1369_v21  ;;  %v1934_v14 = vmul.f32 0.2, %v3217_v22  ;;  %v2122_v30 = vrot.slane %v3217_v22, 4 }
 0x1d3   :  { %v2364_v12 = vpop.eup %2363  ;;  %1415 = vst [vmem:[#allocation7 + $0x40] sm:$0xff] %v1404_v49  ;;  %1581 = vst [vmem:[#allocation7 + $0xf0] sm:$0xff] %v1570_v16  ;;  %v2176_v47 = vrot.slane %v1922_v7, 4  ;;  %v1901_v24 = vmul.f32 %v3217_v22, %v1172_v62 }
 0x1d4   :  { %v1966_v5 = vmul.f32 %v2364_v12, %v2848_v9  ;;  %v1954_v32 = vmul.f32 1.442695, %v1934_v14  ;;  %v2144_v19 = vsel %vm1383_vm0, %v2122_v30, %v3189_v25  ;;  %v1238_v9 = vadd.f32 %v3189_v25, %v1205_v63 }
 0x1d5   :  { %2155 = vst [vmem:[#allocation7 + $0x1a8] sm:$0xff] %v2144_v19  ;;  %v1912_v57 = vmul.f32 0.1, %v1901_v24 }
 0x1d6   :  { %v1977_v45 = vmul.f32 0.5, %v1966_v5  ;;  %v2209_v50 = vrot.slane %v1966_v5, 4  ;;  %2367 = vpow2.f32 %v1954_v32  ;;  %v1493_v37 = vrot.slane %v1238_v9, 4 }
 0x1d7   :  { %v1923_v15 = vadd.f32 %v1912_v57, %v3189_v25 }
 0x1d8   :  { %v1999_v38 = vrot.slane %v1977_v45, 2  ;;  %v2231_v6 = vsel %vm1539_vm1, %v2176_v47, %v2209_v50 }
 0x1d9   :  { %v2366_v31 = vpop.eup %2365  ;;  %v2177_v10 = vrot.slane %v1923_v15, 4 }
 0x1da   :  { %v2021_v60 = vsub.f32 %v1922_v7, %v1999_v38  ;;  %v2032_v35 = vadd.f32 %v1999_v38, %v1922_v7  ;;  %v1282_v20 = vmul.f32 %v2366_v31, %v3189_v25 }
 0x1dc   :  { %v2054_v0 = vrot.slane %v2032_v35, 6  ;;  %v2076_v56 = vsel %vm1383_vm0, %v3164_v53, %v2021_v60  ;;  %v2242_v59 = vsel %vm1383_vm0, %v2231_v6, %v2021_v60  ;;  %v1293_v8 = vmul.f32 0.5, %v1282_v20 }
 0x1dd   :  { %v1526_v27 = vrot.slane %v1282_v20, 4 }
 0x1de   :  { %v2087_v51 = vsel %vm1395_vm2, %v2076_v56, %v2054_v0  ;;  %v2253_v2 = vsel %vm1395_vm2, %v2242_v59, %v2054_v0  ;;  %v1315_v41 = vrot.slane %v1293_v8, 2 }
 0x1df   :  { %2099 = vst [vmem:[#allocation7 + $0x148] sm:$0xff] %v2087_v51  ;;  %2264 = vst [vmem:[#allocation7 + $0x1f8] sm:$0xff] %v2253_v2  ;;  %v1549_v28 = vsel %vm1539_vm1, %v1493_v37, %v1526_v27 }
 0x1e0   :  { %v1337_v55 = vsub.f32 %v1238_v9, %v1315_v41  ;;  %v1348_v13 = vadd.f32 %v1315_v41, %v1238_v9 }
 0x1e2   :  { %v1370_v58 = vrot.slane %v1348_v13, 6  ;;  %v1393_v53 = vsel %vm1383_vm0, %v3185_v36, %v1337_v55  ;;  %v1560_v33 = vsel %vm1383_vm0, %v1549_v28, %v1337_v55 }
 0x1e3   :  { %v2368_v42 = vpop.eup %2367 }
 0x1e4   :  { %v1405_v61 = vsel %vm1395_vm2, %v1393_v53, %v1370_v58  ;;  %v1571_v26 = vsel %vm1395_vm2, %v1560_v33, %v1370_v58  ;;  %v1967_v18 = vmul.f32 %v2368_v42, %v3189_v25 }
 0x1e5   :  { %1416 = vst [vmem:[#allocation7 + $0x48] sm:$0xff] %v1405_v61  ;;  %1582 = vst [vmem:[#allocation7 + $0xf8] sm:$0xff] %v1571_v26 }
 0x1e6   :  { %v1978_v52 = vmul.f32 0.5, %v1967_v18  ;;  %v2210_v39 = vrot.slane %v1967_v18, 4 }
 0x1e8   :  { %v2000_v34 = vrot.slane %v1978_v52, 2  ;;  %v2232_v40 = vsel %vm1539_vm1, %v2177_v10, %v2210_v39 }
 0x1ea   :  { %v2022_v48 = vsub.f32 %v1923_v15, %v2000_v34  ;;  %v2033_v36 = vadd.f32 %v2000_v34, %v1923_v15 }
 0x1ec   :  { %v2055_v4 = vrot.slane %v2033_v36, 6  ;;  %v2077_v23 = vsel %vm1383_vm0, %v3217_v22, %v2022_v48  ;;  %v2243_v1 = vsel %vm1383_vm0, %v2232_v40, %v2022_v48 }
 0x1ee   :  { %v2088_v29 = vsel %vm1395_vm2, %v2077_v23, %v2055_v4  ;;  %v2254_v25 = vsel %vm1395_vm2, %v2243_v1, %v2055_v4 }
 0x1ef   :  { %2100 = vst [vmem:[#allocation7 + $0x150] sm:$0xff] %v2088_v29  ;;  %2265 = vst [vmem:[#allocation7 + $0x200] sm:$0xff] %v2254_v25 }
 0x1f0   :  { %2420 = shalt.err (!%p2417_p0)
}
 0x1f1   :  { %2278 = dma.vmem_to_hbm [thread:$0]  %s2273_s26, 8448, %s3260_s3, [#allocation4], %s2436_s15, %s2436_s15, %s2437_s16  }
 0x1f2   :  { %2433 = dma.done.wait [#allocation4], 8448  }
 0x1f3   :  { %2434 = vsyncadd [#allocation4], 4294958848 }
 0x1f4   :  { %2282 = vsyncpa [#allocation3], 1 }
 0x1f5   :  { %2283 = vsyncpa [#allocation6], 1 }
 0x1f6   :  { %2284 = vsyncpa [#allocation4], 1 }

</bundles_post_ra>
